<compile_context>
chip_gen: v7x
topology: tpu7x:2x2x1
jax: 0.10.0
libtpu: 0.0.40
codegen_flags: <defaults>
</compile_context>

<pallas_src>
import functools

import jax
import jax.numpy as jnp
from jax.experimental import pallas as pl
from jax.experimental.pallas import tpu as pltpu

EPS = 1e-5

# Version-robust CompilerParams lookup (older releases call it TPUCompilerParams).
_CompilerParams = getattr(pltpu, "CompilerParams", None) or getattr(
    pltpu, "TPUCompilerParams")


def _compiler_params():
    return _CompilerParams(
        dimension_semantics=("parallel", "parallel"),
        vmem_limit_bytes=40 * 1024 * 1024,
    )


# --------------------------------------------------------------------------- #
# Kernel 1: 3x3 conv (stride 1) on a pre-padded row tile + BN partial sums.
# --------------------------------------------------------------------------- #
def _conv1_kernel(xa_ref, xb_ref, w_ref, y_ref, part_ref):
    """xa: (1, TH, W+2, Cin)   padded rows [i*TH, i*TH+TH)
       xb: (1, 2,  W+2, Cin)   padded rows [i*TH+TH, i*TH+TH+2)   (halo)
       w:  (9, Cin, Cmid)      tap index = kh*3 + kw
       y:  (1, TH, W, Cmid)    raw (pre-BN) conv output, f32
       part: (1, 1, 2, Cmid)   per-block [sum, sum_of_squares] (f32)
    """
    TH = xa_ref.shape[1]
    Wp = xa_ref.shape[2]
    Cin = xa_ref.shape[3]
    W = Wp - 2
    Cmid = w_ref.shape[2]

    x = jnp.concatenate([xa_ref[0], xb_ref[0]], axis=0)        # (TH+2, W+2, Cin)

    acc = jnp.zeros((TH * W, Cmid), jnp.float32)
    for kh in range(3):
        for kw in range(3):
            patch = x[kh:kh + TH, kw:kw + W, :].reshape(TH * W, Cin)
            acc = acc + jnp.dot(patch, w_ref[kh * 3 + kw],
                                preferred_element_type=jnp.float32)

    y_ref[...] = acc.reshape(1, TH, W, Cmid).astype(y_ref.dtype)
    s = jnp.sum(acc, axis=0, keepdims=True)                    # (1, Cmid)
    sq = jnp.sum(acc * acc, axis=0, keepdims=True)             # (1, Cmid)
    part_ref[...] = jnp.concatenate([s, sq], axis=0).reshape(1, 1, 2, Cmid)


def _conv1(xp, w1, row_tile):
    N, Hp, Wp, Cin = xp.shape
    H, W = Hp - 2, Wp - 2
    Cmid = w1.shape[2]
    TH = row_tile
    HB = H // TH
    return pl.pallas_call(
        _conv1_kernel,
        grid=(N, HB),
        in_specs=[
            pl.BlockSpec((1, TH, Wp, Cin), lambda n, i: (n, i, 0, 0)),
            pl.BlockSpec((1, 2, Wp, Cin),
                         lambda n, i: (n, (i + 1) * (TH // 2), 0, 0)),
            pl.BlockSpec((9, Cin, Cmid), lambda n, i: (0, 0, 0)),
        ],
        out_specs=[
            pl.BlockSpec((1, TH, W, Cmid), lambda n, i: (n, i, 0, 0)),
            pl.BlockSpec((1, 1, 2, Cmid), lambda n, i: (n, i, 0, 0)),
        ],
        out_shape=(
            jax.ShapeDtypeStruct((N, H, W, Cmid), jnp.float32),
            jax.ShapeDtypeStruct((N, HB, 2, Cmid), jnp.float32),
        ),
        compiler_params=_compiler_params(),
    )(xp, xp, w1)


# --------------------------------------------------------------------------- #
# Kernel 2: BN1 + ReLU fused into the polyphase (sub-pixel) 3x3/s2 transpose conv.
# --------------------------------------------------------------------------- #
def _bnrelu_upconv_kernel(ya_ref, yb_ref, a1_ref, c1_ref, w_ref,
                          y2_ref, part_ref):
    """ya: (1, T, W, Cmid)    raw conv1 rows [i*T, i*T+T)      (f32)
       yb: (1, 1, W, Cmid)    row min(i*T+T, H-1)  -> masked to 0 on the last block
       a1, c1: (1, Cmid)      BN1 scale / shift (f32)
       w:  (4, Cmid, 4*Cout)  polyphase weight: input offset (dy,dx) -> 2x2 sub-pixels
       y2: (1, T, W, 4*Cout)  raw (pre-BN2) upsample output, sub-pixel packed (f32)
       part: (1, 1, 2, 4*Cout) per-block [sum, sum_of_squares]
    """
    T = ya_ref.shape[1]
    W = ya_ref.shape[2]
    Cmid = ya_ref.shape[3]
    C4 = w_ref.shape[2]

    a1 = a1_ref[...].reshape(1, 1, Cmid)
    c1 = c1_ref[...].reshape(1, 1, Cmid)

    # BN1 + ReLU (fused) -- applied before the halo masking so the conceptual
    # zero-padding of the transposed conv is zero *after* the activation.
    y_main = jnp.maximum(ya_ref[0] * a1 + c1, 0.0)             # (T, W, Cmid)
    y_tail = jnp.maximum(yb_ref[0] * a1 + c1, 0.0)             # (1, W, Cmid)
    is_last = pl.program_id(1) == pl.num_programs(1) - 1
    y_tail = y_tail * jnp.where(is_last, 0.0, 1.0).astype(y_tail.dtype)

    y = jnp.concatenate([y_main, y_tail], axis=0).astype(w_ref.dtype)  # (T+1, W, Cmid)
    zcol = jnp.zeros((T + 1, 1, Cmid), y.dtype)                # right halo column
    ye = jnp.concatenate([y, zcol], axis=1)                    # (T+1, W+1, Cmid)

    # Polyphase: out[2i+py, 2j+px] = sum_{dy,dx in {0,1}} y1n[i+dy, j+dx] @ W[dy,dx,py,px]
    acc = jnp.zeros((T * W, C4), jnp.float32)
    for dy in range(2):
        for dx in range(2):
            patch = ye[dy:dy + T, dx:dx + W, :].reshape(T * W, Cmid)
            acc = acc + jnp.dot(patch, w_ref[dy * 2 + dx],
                                preferred_element_type=jnp.float32)

    y2_ref[...] = acc.reshape(1, T, W, C4)
    s = jnp.sum(acc, axis=0, keepdims=True)
    sq = jnp.sum(acc * acc, axis=0, keepdims=True)
    part_ref[...] = jnp.concatenate([s, sq], axis=0).reshape(1, 1, 2, C4)


def _bnrelu_upconv(y1, a1, c1, w2, row_tile):
    N, H, W, Cmid = y1.shape
    C4 = w2.shape[2]
    T = row_tile
    HB = H // T
    return pl.pallas_call(
        _bnrelu_upconv_kernel,
        grid=(N, HB),
        in_specs=[
            pl.BlockSpec((1, T, W, Cmid), lambda n, i: (n, i, 0, 0)),
            pl.BlockSpec((1, 1, W, Cmid),
                         lambda n, i: (n, jnp.minimum((i + 1) * T, H - 1), 0, 0)),
            pl.BlockSpec((1, Cmid), lambda n, i: (0, 0)),
            pl.BlockSpec((1, Cmid), lambda n, i: (0, 0)),
            pl.BlockSpec((4, Cmid, C4), lambda n, i: (0, 0, 0)),
        ],
        out_specs=[
            pl.BlockSpec((1, T, W, C4), lambda n, i: (n, i, 0, 0)),
            pl.BlockSpec((1, 1, 2, C4), lambda n, i: (n, i, 0, 0)),
        ],
        out_shape=(
            jax.ShapeDtypeStruct((N, H, W, C4), jnp.float32),
            jax.ShapeDtypeStruct((N, HB, 2, C4), jnp.float32),
        ),
        compiler_params=_compiler_params(),
    )(y1, y1, a1, c1, w2)


# --------------------------------------------------------------------------- #
# Kernel 3: BN2 + ReLU epilogue on the packed sub-pixel slab (tiled, elementwise).
# --------------------------------------------------------------------------- #
def _bn_relu_kernel(y_ref, a_ref, c_ref, o_ref):
    a = a_ref[...].reshape(1, 1, 1, -1)
    c = c_ref[...].reshape(1, 1, 1, -1)
    o_ref[...] = jnp.maximum(y_ref[...] * a + c, 0.0).astype(o_ref.dtype)


def _bn_relu(y2, a2p, c2p, row_tile):
    N, H, W, C4 = y2.shape
    T = row_tile
    HB = H // T
    return pl.pallas_call(
        _bn_relu_kernel,
        grid=(N, HB),
        in_specs=[
            pl.BlockSpec((1, T, W, C4), lambda n, i: (n, i, 0, 0)),
            pl.BlockSpec((1, C4), lambda n, i: (0, 0)),
            pl.BlockSpec((1, C4), lambda n, i: (0, 0)),
        ],
        out_specs=pl.BlockSpec((1, T, W, C4), lambda n, i: (n, i, 0, 0)),
        out_shape=jax.ShapeDtypeStruct((N, H, W, C4), jnp.float32),
        compiler_params=_compiler_params(),
    )(y2, a2p, c2p)


# --------------------------------------------------------------------------- #
# Weight folding + BN helpers (tiny, done once per call in XLA).
# --------------------------------------------------------------------------- #
def _fold_conv_weight(w_conv, dtype):
    # PyTorch Conv2d weight (Cmid, Cin, 3, 3) -> (9, Cin, Cmid), tap = kh*3 + kw.
    Cin = w_conv.shape[1]
    Cmid = w_conv.shape[0]
    return jnp.transpose(w_conv, (2, 3, 1, 0)).reshape(9, Cin, Cmid).astype(dtype)


def _fold_upconv_weight(w_up, dtype):
    # PyTorch ConvTranspose2d weight (Cmid, Cout, 3, 3), k=3/s=2/p=1/op=1.
    # Polyphase: out[2i+py, 2j+px] += y1n[i+dy, j+dx] @ w_up[:, :, 1+py-2dy, 1+px-2dx]
    # (taps whose index falls outside [0,3) contribute zero).
    Cmid, Cout = w_up.shape[0], w_up.shape[1]
    taps = []
    for dy in range(2):
        for dx in range(2):
            cols = []
            for py in range(2):
                for px in range(2):
                    kh = 1 + py - 2 * dy
                    kw = 1 + px - 2 * dx
                    if 0 <= kh < 3 and 0 <= kw < 3:
                        cols.append(w_up[:, :, kh, kw])
                    else:
                        cols.append(jnp.zeros((Cmid, Cout), w_up.dtype))
            taps.append(jnp.concatenate(cols, axis=1))          # (Cmid, 4*Cout)
    return jnp.stack(taps, axis=0).astype(dtype)                # (4, Cmid, 4*Cout)


def _bn_scale_shift(s, sq, count, gamma, beta):
    mean = s / count
    var = sq / count - mean * mean
    scale = gamma * jax.lax.rsqrt(var + EPS)
    shift = beta - mean * scale
    return scale.astype(jnp.float32), shift.astype(jnp.float32)


def _pick_row_tile(H, max_rows=64):
    t = 2
    for cand in range(2, min(H, max_rows) + 1, 2):
        if H % cand == 0:
            t = cand
    return t


# --------------------------------------------------------------------------- #
# Module-facing forward (PyTorch-equivalent, NCHW in / NCHW out).
# --------------------------------------------------------------------------- #
def decoder_block_forward(x_nchw, w_conv, w_up, g1, b1, g2, b2,
                          *, feed_dtype=jnp.bfloat16, row_tile=None):
    """x: (N, Cin, H, W) -> (N, Cout, 2H, 2W).  feed_dtype = MXU operand dtype."""
    N, Cin, H, W = x_nchw.shape
    Cmid = w_conv.shape[0]
    Cout = w_up.shape[1]
    assert H % 2 == 0 and W % 2 == 0, "H and W must be even"
    if row_tile is None:
        row_tile = _pick_row_tile(H)
    assert row_tile % 2 == 0 and H % row_tile == 0

    x = jnp.transpose(x_nchw, (0, 2, 3, 1)).astype(jnp.float32)        # NHWC
    xp = jnp.pad(x, ((0, 0), (1, 1), (1, 1), (0, 0))).astype(feed_dtype)

    # ---- stage 1: Conv2d(3x3, s=1, p=1, no bias) + BN1 partial stats --------
    w1 = _fold_conv_weight(w_conv, feed_dtype)
    y1, part1 = _conv1(xp, w1, row_tile)

    p1 = jnp.sum(part1, axis=(0, 1))                                   # (2, Cmid)
    a1, c1 = _bn_scale_shift(p1[0], p1[1], N * H * W, g1, b1)

    # ---- stage 2: BN1+ReLU fused into polyphase ConvTranspose(3x3, s=2) -----
    w2 = _fold_upconv_weight(w_up, feed_dtype)
    y2, part2 = _bnrelu_upconv(y1, a1.reshape(1, Cmid), c1.reshape(1, Cmid),
                               w2, row_tile)

    p2 = jnp.sum(part2, axis=(0, 1)).reshape(2, 4, Cout).sum(axis=1)   # (2, Cout)
    a2, c2 = _bn_scale_shift(p2[0], p2[1], N * (2 * H) * (2 * W), g2, b2)
    a2p = jnp.tile(a2, 4).reshape(1, 4 * Cout)
    c2p = jnp.tile(c2, 4).reshape(1, 4 * Cout)

    # ---- BN2 + ReLU on the packed sub-pixel slab ----------------------------
    y2n = _bn_relu(y2, a2p, c2p, row_tile)

    # depth-to-space (sub-pixel interleave) folded into the NHWC->NCHW transpose
    out = y2n.reshape(N, H, W, 2, 2, Cout)
    out = jnp.transpose(out, (0, 5, 1, 3, 2, 4)).reshape(N, Cout, 2 * H, 2 * W)
    return out


# ---------------------------- pure-JAX reference --------------------------- #
def _reference(x_nchw, w_conv, w_up, g1, b1, g2, b2):
    def bn_relu(y, g, b):
        m = jnp.mean(y, axis=(0, 2, 3), keepdims=True)
        v = jnp.mean((y - m) ** 2, axis=(0, 2, 3), keepdims=True)
        y = (y - m) * jax.lax.rsqrt(v + EPS) * g.reshape(1, -1, 1, 1) \
            + b.reshape(1, -1, 1, 1)
        return jnp.maximum(y, 0.0)

    y = jax.lax.conv_general_dilated(
        x_nchw, w_conv, (1, 1), ((1, 1), (1, 1)),
        dimension_numbers=("NCHW", "OIHW", "NCHW"))
    y = bn_relu(y, g1, b1)
    # conv-transpose as lhs-dilated conv with flipped / transposed kernel
    w_t = jnp.transpose(w_up[:, :, ::-1, ::-1], (1, 0, 2, 3))           # (Cout, Cmid, 3, 3)
    y = jax.lax.conv_general_dilated(
        y, w_t, (1, 1), ((1, 2), (1, 2)), lhs_dilation=(2, 2),
        dimension_numbers=("NCHW", "OIHW", "NCHW"))
    y = bn_relu(y, g2, b2)
    return y


if __name__ == "__main__":
    key = jax.random.PRNGKey(0)
    N, Cin, Cmid, Cout, H, W = 2, 4, 8, 4, 16, 16

    k = jax.random.split(key, 7)
    x = jax.random.normal(k[0], (N, Cin, H, W), jnp.float32)
    w_conv = 0.1 * jax.random.normal(k[1], (Cmid, Cin, 3, 3), jnp.float32)   # Conv2d
    w_up = 0.1 * jax.random.normal(k[2], (Cmid, Cout, 3, 3), jnp.float32)    # ConvTranspose2d
    g1 = 1.0 + 0.1 * jax.random.normal(k[3], (Cmid,), jnp.float32)
    b1 = 0.1 * jax.random.normal(k[4], (Cmid,), jnp.float32)
    g2 = 1.0 + 0.1 * jax.random.normal(k[5], (Cout,), jnp.float32)
    b2 = 0.1 * jax.random.normal(k[6], (Cout,), jnp.float32)
    # TODO(synk): BatchNorm running-stat updates (training-mode side effect that does
    # not affect the forward output) are not reproduced.

    ref = jax.block_until_ready(_reference(x, w_conv, w_up, g1, b1, g2, b2))

    # Exact path (f32 MXU feeds): must match the PyTorch/f32 forward tightly.
    fwd_f32 = jax.jit(functools.partial(decoder_block_forward,
                                        feed_dtype=jnp.float32, row_tile=8))
    out_f32 = jax.block_until_ready(fwd_f32(x, w_conv, w_up, g1, b1, g2, b2))
    assert out_f32.shape == (N, Cout, 2 * H, 2 * W), out_f32.shape
    if not jnp.allclose(out_f32, ref, rtol=1e-3, atol=1e-3):
        raise AssertionError(
            f"f32 path mismatch vs reference, max abs diff = "
            f"{jnp.max(jnp.abs(out_f32 - ref))}")

    # Fast path (bf16 MXU feeds, f32 accumulation / BN): bf16 input rounding only.
    fwd_bf16 = jax.jit(functools.partial(decoder_block_forward,
                                         feed_dtype=jnp.bfloat16, row_tile=8))
    out_bf16 = jax.block_until_ready(fwd_bf16(x, w_conv, w_up, g1, b1, g2, b2))
    assert out_bf16.shape == (N, Cout, 2 * H, 2 * W), out_bf16.shape
    if not jnp.allclose(out_bf16, ref, rtol=5e-2, atol=5e-2):
        raise AssertionError(
            f"bf16 path mismatch vs reference, max abs diff = "
            f"{jnp.max(jnp.abs(out_bf16 - ref))}")

    print("KERNEL_OK")
</pallas_src>

<mosaic_0001>
module attributes {stable_mosaic.version = 11 : i64} {
  func.func @_conv1_kernel(%arg0: i32, %arg1: i32, %arg2: memref<1x8x18x4xf32, #tpu.memory_space<vmem>>, %arg3: memref<1x2x18x4xf32, #tpu.memory_space<vmem>>, %arg4: memref<9x4x8xf32, #tpu.memory_space<vmem>>, %arg5: memref<1x8x16x8xf32, #tpu.memory_space<vmem>>, %arg6: memref<1x1x2x8xf32, #tpu.memory_space<vmem>>) attributes {dimension_semantics = [#tpu.dimension_semantics<parallel>, #tpu.dimension_semantics<parallel>], iteration_bounds = array<i64: 2, 2>, scalar_prefetch = 0 : i64, scratch_operands = 0 : i64, tpu.core_type = #tpu.core_type<tc>, window_params = [{transform_indices = @transform_0, window_bounds = array<i64: 1, 8, 18, 4>}, {transform_indices = @transform_1, window_bounds = array<i64: 1, 2, 18, 4>}, {pipeline_mode = #tpu.pipeline_mode<synchronous>, transform_indices = @transform_2, window_bounds = array<i64: 9, 4, 8>}, {transform_indices = @transform_3, window_bounds = array<i64: 1, 8, 16, 8>}, {transform_indices = @transform_4, window_bounds = array<i64: 1, 1, 2, 8>}]} {
    %c0 = arith.constant 0 : index
    %c0_0 = arith.constant 0 : index
    %c0_1 = arith.constant 0 : index
    %c0_2 = arith.constant 0 : index
    %0 = vector.load %arg2[%c0, %c0_0, %c0_1, %c0_2] : memref<1x8x18x4xf32, #tpu.memory_space<vmem>>, vector<1x8x18x4xf32>
    %1 = vector.shape_cast %0 : vector<1x8x18x4xf32> to vector<8x18x4xf32>
    %c0_3 = arith.constant 0 : index
    %c0_4 = arith.constant 0 : index
    %c0_5 = arith.constant 0 : index
    %c0_6 = arith.constant 0 : index
    %2 = vector.load %arg3[%c0_3, %c0_4, %c0_5, %c0_6] : memref<1x2x18x4xf32, #tpu.memory_space<vmem>>, vector<1x2x18x4xf32>
    %3 = vector.shape_cast %2 : vector<1x2x18x4xf32> to vector<2x18x4xf32>
    %4 = tpu.concatenate %1, %3 in 0 : vector<8x18x4xf32>, vector<2x18x4xf32> -> vector<10x18x4xf32>
    %cst = arith.constant 0.000000e+00 : f32
    %5 = vector.broadcast %cst : f32 to vector<128x8xf32>
    %6 = vector.extract_strided_slice %4 {offsets = [0, 0, 0], sizes = [8, 16, 4], strides = [1, 1, 1]} : vector<10x18x4xf32> to vector<8x16x4xf32>
    %7 = vector.shape_cast %6 : vector<8x16x4xf32> to vector<128x4xf32>
    %c0_7 = arith.constant 0 : index
    %c0_8 = arith.constant 0 : index
    %c0_9 = arith.constant 0 : index
    %8 = vector.load %arg4[%c0_7, %c0_8, %c0_9] : memref<9x4x8xf32, #tpu.memory_space<vmem>>, vector<1x4x8xf32>
    %9 = vector.shape_cast %8 : vector<1x4x8xf32> to vector<4x8xf32>
    %cst_10 = arith.constant dense<0.000000e+00> : vector<128x8xf32>
    %10 = tpu.matmul %7, %9, %cst_10 {dimension_numbers = #tpu.dot_dimension_numbers<[1], [0], [0], [1], [0, 0, 1, 1], [], []>} : vector<128x4xf32>, vector<4x8xf32>, vector<128x8xf32> -> vector<128x8xf32>
    %11 = arith.addf %5, %10 : vector<128x8xf32>
    %12 = vector.extract_strided_slice %4 {offsets = [0, 1, 0], sizes = [8, 16, 4], strides = [1, 1, 1]} : vector<10x18x4xf32> to vector<8x16x4xf32>
    %13 = vector.shape_cast %12 : vector<8x16x4xf32> to vector<128x4xf32>
    %c1 = arith.constant 1 : index
    %c0_11 = arith.constant 0 : index
    %c0_12 = arith.constant 0 : index
    %14 = vector.load %arg4[%c1, %c0_11, %c0_12] : memref<9x4x8xf32, #tpu.memory_space<vmem>>, vector<1x4x8xf32>
    %15 = vector.shape_cast %14 : vector<1x4x8xf32> to vector<4x8xf32>
    %cst_13 = arith.constant dense<0.000000e+00> : vector<128x8xf32>
    %16 = tpu.matmul %13, %15, %cst_13 {dimension_numbers = #tpu.dot_dimension_numbers<[1], [0], [0], [1], [0, 0, 1, 1], [], []>} : vector<128x4xf32>, vector<4x8xf32>, vector<128x8xf32> -> vector<128x8xf32>
    %17 = arith.addf %11, %16 : vector<128x8xf32>
    %18 = vector.extract_strided_slice %4 {offsets = [0, 2, 0], sizes = [8, 16, 4], strides = [1, 1, 1]} : vector<10x18x4xf32> to vector<8x16x4xf32>
    %19 = vector.shape_cast %18 : vector<8x16x4xf32> to vector<128x4xf32>
    %c2 = arith.constant 2 : index
    %c0_14 = arith.constant 0 : index
    %c0_15 = arith.constant 0 : index
    %20 = vector.load %arg4[%c2, %c0_14, %c0_15] : memref<9x4x8xf32, #tpu.memory_space<vmem>>, vector<1x4x8xf32>
    %21 = vector.shape_cast %20 : vector<1x4x8xf32> to vector<4x8xf32>
    %cst_16 = arith.constant dense<0.000000e+00> : vector<128x8xf32>
    %22 = tpu.matmul %19, %21, %cst_16 {dimension_numbers = #tpu.dot_dimension_numbers<[1], [0], [0], [1], [0, 0, 1, 1], [], []>} : vector<128x4xf32>, vector<4x8xf32>, vector<128x8xf32> -> vector<128x8xf32>
    %23 = arith.addf %17, %22 : vector<128x8xf32>
    %24 = vector.extract_strided_slice %4 {offsets = [1, 0, 0], sizes = [8, 16, 4], strides = [1, 1, 1]} : vector<10x18x4xf32> to vector<8x16x4xf32>
    %25 = vector.shape_cast %24 : vector<8x16x4xf32> to vector<128x4xf32>
    %c3 = arith.constant 3 : index
    %c0_17 = arith.constant 0 : index
    %c0_18 = arith.constant 0 : index
    %26 = vector.load %arg4[%c3, %c0_17, %c0_18] : memref<9x4x8xf32, #tpu.memory_space<vmem>>, vector<1x4x8xf32>
    %27 = vector.shape_cast %26 : vector<1x4x8xf32> to vector<4x8xf32>
    %cst_19 = arith.constant dense<0.000000e+00> : vector<128x8xf32>
    %28 = tpu.matmul %25, %27, %cst_19 {dimension_numbers = #tpu.dot_dimension_numbers<[1], [0], [0], [1], [0, 0, 1, 1], [], []>} : vector<128x4xf32>, vector<4x8xf32>, vector<128x8xf32> -> vector<128x8xf32>
    %29 = arith.addf %23, %28 : vector<128x8xf32>
    %30 = vector.extract_strided_slice %4 {offsets = [1, 1, 0], sizes = [8, 16, 4], strides = [1, 1, 1]} : vector<10x18x4xf32> to vector<8x16x4xf32>
    %31 = vector.shape_cast %30 : vector<8x16x4xf32> to vector<128x4xf32>
    %c4 = arith.constant 4 : index
    %c0_20 = arith.constant 0 : index
    %c0_21 = arith.constant 0 : index
    %32 = vector.load %arg4[%c4, %c0_20, %c0_21] : memref<9x4x8xf32, #tpu.memory_space<vmem>>, vector<1x4x8xf32>
    %33 = vector.shape_cast %32 : vector<1x4x8xf32> to vector<4x8xf32>
    %cst_22 = arith.constant dense<0.000000e+00> : vector<128x8xf32>
    %34 = tpu.matmul %31, %33, %cst_22 {dimension_numbers = #tpu.dot_dimension_numbers<[1], [0], [0], [1], [0, 0, 1, 1], [], []>} : vector<128x4xf32>, vector<4x8xf32>, vector<128x8xf32> -> vector<128x8xf32>
    %35 = arith.addf %29, %34 : vector<128x8xf32>
    %36 = vector.extract_strided_slice %4 {offsets = [1, 2, 0], sizes = [8, 16, 4], strides = [1, 1, 1]} : vector<10x18x4xf32> to vector<8x16x4xf32>
    %37 = vector.shape_cast %36 : vector<8x16x4xf32> to vector<128x4xf32>
    %c5 = arith.constant 5 : index
    %c0_23 = arith.constant 0 : index
    %c0_24 = arith.constant 0 : index
    %38 = vector.load %arg4[%c5, %c0_23, %c0_24] : memref<9x4x8xf32, #tpu.memory_space<vmem>>, vector<1x4x8xf32>
    %39 = vector.shape_cast %38 : vector<1x4x8xf32> to vector<4x8xf32>
    %cst_25 = arith.constant dense<0.000000e+00> : vector<128x8xf32>
    %40 = tpu.matmul %37, %39, %cst_25 {dimension_numbers = #tpu.dot_dimension_numbers<[1], [0], [0], [1], [0, 0, 1, 1], [], []>} : vector<128x4xf32>, vector<4x8xf32>, vector<128x8xf32> -> vector<128x8xf32>
    %41 = arith.addf %35, %40 : vector<128x8xf32>
    %42 = vector.extract_strided_slice %4 {offsets = [2, 0, 0], sizes = [8, 16, 4], strides = [1, 1, 1]} : vector<10x18x4xf32> to vector<8x16x4xf32>
    %43 = vector.shape_cast %42 : vector<8x16x4xf32> to vector<128x4xf32>
    %c6 = arith.constant 6 : index
    %c0_26 = arith.constant 0 : index
    %c0_27 = arith.constant 0 : index
    %44 = vector.load %arg4[%c6, %c0_26, %c0_27] : memref<9x4x8xf32, #tpu.memory_space<vmem>>, vector<1x4x8xf32>
    %45 = vector.shape_cast %44 : vector<1x4x8xf32> to vector<4x8xf32>
    %cst_28 = arith.constant dense<0.000000e+00> : vector<128x8xf32>
    %46 = tpu.matmul %43, %45, %cst_28 {dimension_numbers = #tpu.dot_dimension_numbers<[1], [0], [0], [1], [0, 0, 1, 1], [], []>} : vector<128x4xf32>, vector<4x8xf32>, vector<128x8xf32> -> vector<128x8xf32>
    %47 = arith.addf %41, %46 : vector<128x8xf32>
    %48 = vector.extract_strided_slice %4 {offsets = [2, 1, 0], sizes = [8, 16, 4], strides = [1, 1, 1]} : vector<10x18x4xf32> to vector<8x16x4xf32>
    %49 = vector.shape_cast %48 : vector<8x16x4xf32> to vector<128x4xf32>
    %c7 = arith.constant 7 : index
    %c0_29 = arith.constant 0 : index
    %c0_30 = arith.constant 0 : index
    %50 = vector.load %arg4[%c7, %c0_29, %c0_30] : memref<9x4x8xf32, #tpu.memory_space<vmem>>, vector<1x4x8xf32>
    %51 = vector.shape_cast %50 : vector<1x4x8xf32> to vector<4x8xf32>
    %cst_31 = arith.constant dense<0.000000e+00> : vector<128x8xf32>
    %52 = tpu.matmul %49, %51, %cst_31 {dimension_numbers = #tpu.dot_dimension_numbers<[1], [0], [0], [1], [0, 0, 1, 1], [], []>} : vector<128x4xf32>, vector<4x8xf32>, vector<128x8xf32> -> vector<128x8xf32>
    %53 = arith.addf %47, %52 : vector<128x8xf32>
    %54 = vector.extract_strided_slice %4 {offsets = [2, 2, 0], sizes = [8, 16, 4], strides = [1, 1, 1]} : vector<10x18x4xf32> to vector<8x16x4xf32>
    %55 = vector.shape_cast %54 : vector<8x16x4xf32> to vector<128x4xf32>
    %c8 = arith.constant 8 : index
    %c0_32 = arith.constant 0 : index
    %c0_33 = arith.constant 0 : index
    %56 = vector.load %arg4[%c8, %c0_32, %c0_33] : memref<9x4x8xf32, #tpu.memory_space<vmem>>, vector<1x4x8xf32>
    %57 = vector.shape_cast %56 : vector<1x4x8xf32> to vector<4x8xf32>
    %cst_34 = arith.constant dense<0.000000e+00> : vector<128x8xf32>
    %58 = tpu.matmul %55, %57, %cst_34 {dimension_numbers = #tpu.dot_dimension_numbers<[1], [0], [0], [1], [0, 0, 1, 1], [], []>} : vector<128x4xf32>, vector<4x8xf32>, vector<128x8xf32> -> vector<128x8xf32>
    %59 = arith.addf %53, %58 : vector<128x8xf32>
    %60 = vector.shape_cast %59 : vector<128x8xf32> to vector<1x8x16x8xf32>
    %c0_35 = arith.constant 0 : index
    %c0_36 = arith.constant 0 : index
    %c0_37 = arith.constant 0 : index
    %c0_38 = arith.constant 0 : index
    %61 = vector.load %arg5[%c0_35, %c0_36, %c0_37, %c0_38] : memref<1x8x16x8xf32, #tpu.memory_space<vmem>>, vector<1x8x16x8xf32>
    tpu.vector_store %arg5[%c0_35, %c0_36, %c0_37, %c0_38], %60 {strides = array<i32>} : memref<1x8x16x8xf32, #tpu.memory_space<vmem>>, vector<1x8x16x8xf32>,
    %cst_39 = arith.constant dense<0.000000e+00> : vector<8xf32>
    %62 = vector.multi_reduction <add>, %59, %cst_39 [0] : vector<128x8xf32> to vector<8xf32>
    %63 = vector.shape_cast %62 : vector<8xf32> to vector<1x8xf32>
    %64 = arith.mulf %59, %59 : vector<128x8xf32>
    %cst_40 = arith.constant dense<0.000000e+00> : vector<8xf32>
    %65 = vector.multi_reduction <add>, %64, %cst_40 [0] : vector<128x8xf32> to vector<8xf32>
    %66 = vector.shape_cast %65 : vector<8xf32> to vector<1x8xf32>
    %67 = tpu.concatenate %63, %66 in 0 : vector<1x8xf32>, vector<1x8xf32> -> vector<2x8xf32>
    %68 = vector.shape_cast %67 : vector<2x8xf32> to vector<1x1x2x8xf32>
    %c0_41 = arith.constant 0 : index
    %c0_42 = arith.constant 0 : index
    %c0_43 = arith.constant 0 : index
    %c0_44 = arith.constant 0 : index
    %69 = vector.load %arg6[%c0_41, %c0_42, %c0_43, %c0_44] : memref<1x1x2x8xf32, #tpu.memory_space<vmem>>, vector<1x1x2x8xf32>
    tpu.vector_store %arg6[%c0_41, %c0_42, %c0_43, %c0_44], %68 {strides = array<i32>} : memref<1x1x2x8xf32, #tpu.memory_space<vmem>>, vector<1x1x2x8xf32>,
    return
  }
  func.func @transform_0(%arg0: i32, %arg1: i32) -> (i32, i32, i32, i32) {
    %c0_i32 = arith.constant 0 : i32
    %c0_i32_0 = arith.constant 0 : i32
    %c0_i32_1 = arith.constant 0 : i32
    return %arg0, %arg1, %c0_i32, %c0_i32_0 : i32, i32, i32, i32
  }
  func.func @transform_1(%arg0: i32, %arg1: i32) -> (i32, i32, i32, i32) {
    %c1_i32 = arith.constant 1 : i32
    %0 = arith.addi %arg1, %c1_i32 : i32
    %c4_i32 = arith.constant 4 : i32
    %1 = arith.muli %0, %c4_i32 : i32
    %c0_i32 = arith.constant 0 : i32
    %c0_i32_0 = arith.constant 0 : i32
    %c0_i32_1 = arith.constant 0 : i32
    return %arg0, %1, %c0_i32, %c0_i32_0 : i32, i32, i32, i32
  }
  func.func @transform_2(%arg0: i32, %arg1: i32) -> (i32, i32, i32) {
    %c0_i32 = arith.constant 0 : i32
    %c0_i32_0 = arith.constant 0 : i32
    %c0_i32_1 = arith.constant 0 : i32
    %c0_i32_2 = arith.constant 0 : i32
    return %c0_i32, %c0_i32_0, %c0_i32_1 : i32, i32, i32
  }
  func.func @transform_3(%arg0: i32, %arg1: i32) -> (i32, i32, i32, i32) {
    %c0_i32 = arith.constant 0 : i32
    %c0_i32_0 = arith.constant 0 : i32
    %c0_i32_1 = arith.constant 0 : i32
    return %arg0, %arg1, %c0_i32, %c0_i32_0 : i32, i32, i32, i32
  }
  func.func @transform_4(%arg0: i32, %arg1: i32) -> (i32, i32, i32, i32) {
    %c0_i32 = arith.constant 0 : i32
    %c0_i32_0 = arith.constant 0 : i32
    %c0_i32_1 = arith.constant 0 : i32
    return %arg0, %arg1, %c0_i32, %c0_i32_0 : i32, i32, i32, i32
  }
}

module attributes {stable_mosaic.version = 11 : i64} {
  func.func @_bnrelu_upconv_kernel(%arg0: i32, %arg1: i32, %arg2: memref<1x8x16x8xf32, #tpu.memory_space<vmem>>, %arg3: memref<1x1x16x8xf32, #tpu.memory_space<vmem>>, %arg4: memref<1x8xf32, #tpu.memory_space<vmem>>, %arg5: memref<1x8xf32, #tpu.memory_space<vmem>>, %arg6: memref<4x8x16xf32, #tpu.memory_space<vmem>>, %arg7: memref<1x8x16x16xf32, #tpu.memory_space<vmem>>, %arg8: memref<1x1x2x16xf32, #tpu.memory_space<vmem>>) attributes {dimension_semantics = [#tpu.dimension_semantics<parallel>, #tpu.dimension_semantics<parallel>], iteration_bounds = array<i64: 2, 2>, scalar_prefetch = 0 : i64, scratch_operands = 0 : i64, tpu.core_type = #tpu.core_type<tc>, window_params = [{transform_indices = @transform_0, window_bounds = array<i64: 1, 8, 16, 8>}, {transform_indices = @transform_1, window_bounds = array<i64: 1, 1, 16, 8>}, {pipeline_mode = #tpu.pipeline_mode<synchronous>, transform_indices = @transform_2, window_bounds = array<i64: 1, 8>}, {pipeline_mode = #tpu.pipeline_mode<synchronous>, transform_indices = @transform_3, window_bounds = array<i64: 1, 8>}, {pipeline_mode = #tpu.pipeline_mode<synchronous>, transform_indices = @transform_4, window_bounds = array<i64: 4, 8, 16>}, {transform_indices = @transform_5, window_bounds = array<i64: 1, 8, 16, 16>}, {transform_indices = @transform_6, window_bounds = array<i64: 1, 1, 2, 16>}]} {
    %c0 = arith.constant 0 : index
    %c0_0 = arith.constant 0 : index
    %0 = vector.load %arg4[%c0, %c0_0] : memref<1x8xf32, #tpu.memory_space<vmem>>, vector<1x8xf32>
    %1 = vector.shape_cast %0 : vector<1x8xf32> to vector<1x1x8xf32>
    %c0_1 = arith.constant 0 : index
    %c0_2 = arith.constant 0 : index
    %2 = vector.load %arg5[%c0_1, %c0_2] : memref<1x8xf32, #tpu.memory_space<vmem>>, vector<1x8xf32>
    %3 = vector.shape_cast %2 : vector<1x8xf32> to vector<1x1x8xf32>
    %c0_3 = arith.constant 0 : index
    %c0_4 = arith.constant 0 : index
    %c0_5 = arith.constant 0 : index
    %c0_6 = arith.constant 0 : index
    %4 = vector.load %arg2[%c0_3, %c0_4, %c0_5, %c0_6] : memref<1x8x16x8xf32, #tpu.memory_space<vmem>>, vector<1x8x16x8xf32>
    %5 = vector.shape_cast %4 : vector<1x8x16x8xf32> to vector<8x16x8xf32>
    %6 = vector.broadcast %1 : vector<1x1x8xf32> to vector<8x16x8xf32>
    %7 = arith.mulf %5, %6 : vector<8x16x8xf32>
    %8 = vector.broadcast %3 : vector<1x1x8xf32> to vector<8x16x8xf32>
    %9 = arith.addf %7, %8 : vector<8x16x8xf32>
    %cst = arith.constant 0.000000e+00 : f32
    %10 = vector.broadcast %cst : f32 to vector<8x16x8xf32>
    %11 = arith.maximumf %9, %10 : vector<8x16x8xf32>
    %c0_7 = arith.constant 0 : index
    %c0_8 = arith.constant 0 : index
    %c0_9 = arith.constant 0 : index
    %c0_10 = arith.constant 0 : index
    %12 = vector.load %arg3[%c0_7, %c0_8, %c0_9, %c0_10] : memref<1x1x16x8xf32, #tpu.memory_space<vmem>>, vector<1x1x16x8xf32>
    %13 = vector.shape_cast %12 : vector<1x1x16x8xf32> to vector<1x16x8xf32>
    %14 = vector.broadcast %1 : vector<1x1x8xf32> to vector<1x16x8xf32>
    %15 = arith.mulf %13, %14 : vector<1x16x8xf32>
    %16 = vector.broadcast %3 : vector<1x1x8xf32> to vector<1x16x8xf32>
    %17 = arith.addf %15, %16 : vector<1x16x8xf32>
    %cst_11 = arith.constant 0.000000e+00 : f32
    %18 = vector.broadcast %cst_11 : f32 to vector<1x16x8xf32>
    %19 = arith.maximumf %17, %18 : vector<1x16x8xf32>
    %c1_i32 = arith.constant 1 : i32
    %20 = arith.cmpi eq, %arg1, %c1_i32 : i32
    %cst_12 = arith.constant 0.000000e+00 : f32
    %cst_13 = arith.constant 1.000000e+00 : f32
    %21 = arith.select %20, %cst_12, %cst_13 : f32
    %22 = vector.broadcast %21 : f32 to vector<1x16x8xf32>
    %23 = arith.mulf %19, %22 : vector<1x16x8xf32>
    %24 = tpu.concatenate %11, %23 in 0 : vector<8x16x8xf32>, vector<1x16x8xf32> -> vector<9x16x8xf32>
    %cst_14 = arith.constant 0.000000e+00 : f32
    %25 = vector.broadcast %cst_14 : f32 to vector<9x1x8xf32>
    %26 = tpu.concatenate %24, %25 in 1 : vector<9x16x8xf32>, vector<9x1x8xf32> -> vector<9x17x8xf32>
    %cst_15 = arith.constant 0.000000e+00 : f32
    %27 = vector.broadcast %cst_15 : f32 to vector<128x16xf32>
    %28 = vector.extract_strided_slice %26 {offsets = [0, 0, 0], sizes = [8, 16, 8], strides = [1, 1, 1]} : vector<9x17x8xf32> to vector<8x16x8xf32>
    %29 = vector.shape_cast %28 : vector<8x16x8xf32> to vector<128x8xf32>
    %c0_16 = arith.constant 0 : index
    %c0_17 = arith.constant 0 : index
    %c0_18 = arith.constant 0 : index
    %30 = vector.load %arg6[%c0_16, %c0_17, %c0_18] : memref<4x8x16xf32, #tpu.memory_space<vmem>>, vector<1x8x16xf32>
    %31 = vector.shape_cast %30 : vector<1x8x16xf32> to vector<8x16xf32>
    %cst_19 = arith.constant dense<0.000000e+00> : vector<128x16xf32>
    %32 = tpu.matmul %29, %31, %cst_19 {dimension_numbers = #tpu.dot_dimension_numbers<[1], [0], [0], [1], [0, 0, 1, 1], [], []>} : vector<128x8xf32>, vector<8x16xf32>, vector<128x16xf32> -> vector<128x16xf32>
    %33 = arith.addf %27, %32 : vector<128x16xf32>
    %34 = vector.extract_strided_slice %26 {offsets = [0, 1, 0], sizes = [8, 16, 8], strides = [1, 1, 1]} : vector<9x17x8xf32> to vector<8x16x8xf32>
    %35 = vector.shape_cast %34 : vector<8x16x8xf32> to vector<128x8xf32>
    %c1 = arith.constant 1 : index
    %c0_20 = arith.constant 0 : index
    %c0_21 = arith.constant 0 : index
    %36 = vector.load %arg6[%c1, %c0_20, %c0_21] : memref<4x8x16xf32, #tpu.memory_space<vmem>>, vector<1x8x16xf32>
    %37 = vector.shape_cast %36 : vector<1x8x16xf32> to vector<8x16xf32>
    %cst_22 = arith.constant dense<0.000000e+00> : vector<128x16xf32>
    %38 = tpu.matmul %35, %37, %cst_22 {dimension_numbers = #tpu.dot_dimension_numbers<[1], [0], [0], [1], [0, 0, 1, 1], [], []>} : vector<128x8xf32>, vector<8x16xf32>, vector<128x16xf32> -> vector<128x16xf32>
    %39 = arith.addf %33, %38 : vector<128x16xf32>
    %40 = vector.extract_strided_slice %26 {offsets = [1, 0, 0], sizes = [8, 16, 8], strides = [1, 1, 1]} : vector<9x17x8xf32> to vector<8x16x8xf32>
    %41 = vector.shape_cast %40 : vector<8x16x8xf32> to vector<128x8xf32>
    %c2 = arith.constant 2 : index
    %c0_23 = arith.constant 0 : index
    %c0_24 = arith.constant 0 : index
    %42 = vector.load %arg6[%c2, %c0_23, %c0_24] : memref<4x8x16xf32, #tpu.memory_space<vmem>>, vector<1x8x16xf32>
    %43 = vector.shape_cast %42 : vector<1x8x16xf32> to vector<8x16xf32>
    %cst_25 = arith.constant dense<0.000000e+00> : vector<128x16xf32>
    %44 = tpu.matmul %41, %43, %cst_25 {dimension_numbers = #tpu.dot_dimension_numbers<[1], [0], [0], [1], [0, 0, 1, 1], [], []>} : vector<128x8xf32>, vector<8x16xf32>, vector<128x16xf32> -> vector<128x16xf32>
    %45 = arith.addf %39, %44 : vector<128x16xf32>
    %46 = vector.extract_strided_slice %26 {offsets = [1, 1, 0], sizes = [8, 16, 8], strides = [1, 1, 1]} : vector<9x17x8xf32> to vector<8x16x8xf32>
    %47 = vector.shape_cast %46 : vector<8x16x8xf32> to vector<128x8xf32>
    %c3 = arith.constant 3 : index
    %c0_26 = arith.constant 0 : index
    %c0_27 = arith.constant 0 : index
    %48 = vector.load %arg6[%c3, %c0_26, %c0_27] : memref<4x8x16xf32, #tpu.memory_space<vmem>>, vector<1x8x16xf32>
    %49 = vector.shape_cast %48 : vector<1x8x16xf32> to vector<8x16xf32>
    %cst_28 = arith.constant dense<0.000000e+00> : vector<128x16xf32>
    %50 = tpu.matmul %47, %49, %cst_28 {dimension_numbers = #tpu.dot_dimension_numbers<[1], [0], [0], [1], [0, 0, 1, 1], [], []>} : vector<128x8xf32>, vector<8x16xf32>, vector<128x16xf32> -> vector<128x16xf32>
    %51 = arith.addf %45, %50 : vector<128x16xf32>
    %52 = vector.shape_cast %51 : vector<128x16xf32> to vector<1x8x16x16xf32>
    %c0_29 = arith.constant 0 : index
    %c0_30 = arith.constant 0 : index
    %c0_31 = arith.constant 0 : index
    %c0_32 = arith.constant 0 : index
    %53 = vector.load %arg7[%c0_29, %c0_30, %c0_31, %c0_32] : memref<1x8x16x16xf32, #tpu.memory_space<vmem>>, vector<1x8x16x16xf32>
    tpu.vector_store %arg7[%c0_29, %c0_30, %c0_31, %c0_32], %52 {strides = array<i32>} : memref<1x8x16x16xf32, #tpu.memory_space<vmem>>, vector<1x8x16x16xf32>,
    %cst_33 = arith.constant dense<0.000000e+00> : vector<16xf32>
    %54 = vector.multi_reduction <add>, %51, %cst_33 [0] : vector<128x16xf32> to vector<16xf32>
    %55 = vector.shape_cast %54 : vector<16xf32> to vector<1x16xf32>
    %56 = arith.mulf %51, %51 : vector<128x16xf32>
    %cst_34 = arith.constant dense<0.000000e+00> : vector<16xf32>
    %57 = vector.multi_reduction <add>, %56, %cst_34 [0] : vector<128x16xf32> to vector<16xf32>
    %58 = vector.shape_cast %57 : vector<16xf32> to vector<1x16xf32>
    %59 = tpu.concatenate %55, %58 in 0 : vector<1x16xf32>, vector<1x16xf32> -> vector<2x16xf32>
    %60 = vector.shape_cast %59 : vector<2x16xf32> to vector<1x1x2x16xf32>
    %c0_35 = arith.constant 0 : index
    %c0_36 = arith.constant 0 : index
    %c0_37 = arith.constant 0 : index
    %c0_38 = arith.constant 0 : index
    %61 = vector.load %arg8[%c0_35, %c0_36, %c0_37, %c0_38] : memref<1x1x2x16xf32, #tpu.memory_space<vmem>>, vector<1x1x2x16xf32>
    tpu.vector_store %arg8[%c0_35, %c0_36, %c0_37, %c0_38], %60 {strides = array<i32>} : memref<1x1x2x16xf32, #tpu.memory_space<vmem>>, vector<1x1x2x16xf32>,
    return
  }
  func.func @transform_0(%arg0: i32, %arg1: i32) -> (i32, i32, i32, i32) {
    %c0_i32 = arith.constant 0 : i32
    %c0_i32_0 = arith.constant 0 : i32
    %c0_i32_1 = arith.constant 0 : i32
    return %arg0, %arg1, %c0_i32, %c0_i32_0 : i32, i32, i32, i32
  }
  func.func @transform_1(%arg0: i32, %arg1: i32) -> (i32, i32, i32, i32) {
    %c1_i32 = arith.constant 1 : i32
    %0 = arith.addi %arg1, %c1_i32 : i32
    %c8_i32 = arith.constant 8 : i32
    %1 = arith.muli %0, %c8_i32 : i32
    %c15_i32 = arith.constant 15 : i32
    %2 = arith.minsi %1, %c15_i32 : i32
    %c0_i32 = arith.constant 0 : i32
    %c0_i32_0 = arith.constant 0 : i32
    %c0_i32_1 = arith.constant 0 : i32
    return %arg0, %2, %c0_i32, %c0_i32_0 : i32, i32, i32, i32
  }
  func.func @transform_2(%arg0: i32, %arg1: i32) -> (i32, i32) {
    %c0_i32 = arith.constant 0 : i32
    %c0_i32_0 = arith.constant 0 : i32
    %c0_i32_1 = arith.constant 0 : i32
    return %c0_i32, %c0_i32_0 : i32, i32
  }
  func.func @transform_3(%arg0: i32, %arg1: i32) -> (i32, i32) {
    %c0_i32 = arith.constant 0 : i32
    %c0_i32_0 = arith.constant 0 : i32
    %c0_i32_1 = arith.constant 0 : i32
    return %c0_i32, %c0_i32_0 : i32, i32
  }
  func.func @transform_4(%arg0: i32, %arg1: i32) -> (i32, i32, i32) {
    %c0_i32 = arith.constant 0 : i32
    %c0_i32_0 = arith.constant 0 : i32
    %c0_i32_1 = arith.constant 0 : i32
    %c0_i32_2 = arith.constant 0 : i32
    return %c0_i32, %c0_i32_0, %c0_i32_1 : i32, i32, i32
  }
  func.func @transform_5(%arg0: i32, %arg1: i32) -> (i32, i32, i32, i32) {
    %c0_i32 = arith.constant 0 : i32
    %c0_i32_0 = arith.constant 0 : i32
    %c0_i32_1 = arith.constant 0 : i32
    return %arg0, %arg1, %c0_i32, %c0_i32_0 : i32, i32, i32, i32
  }
  func.func @transform_6(%arg0: i32, %arg1: i32) -> (i32, i32, i32, i32) {
    %c0_i32 = arith.constant 0 : i32
    %c0_i32_0 = arith.constant 0 : i32
    %c0_i32_1 = arith.constant 0 : i32
    return %arg0, %arg1, %c0_i32, %c0_i32_0 : i32, i32, i32, i32
  }
}

module attributes {stable_mosaic.version = 11 : i64} {
  func.func @_bn_relu_kernel(%arg0: i32, %arg1: i32, %arg2: memref<1x8x16x16xf32, #tpu.memory_space<vmem>>, %arg3: memref<1x16xf32, #tpu.memory_space<vmem>>, %arg4: memref<1x16xf32, #tpu.memory_space<vmem>>, %arg5: memref<1x8x16x16xf32, #tpu.memory_space<vmem>>) attributes {dimension_semantics = [#tpu.dimension_semantics<parallel>, #tpu.dimension_semantics<parallel>], iteration_bounds = array<i64: 2, 2>, scalar_prefetch = 0 : i64, scratch_operands = 0 : i64, tpu.core_type = #tpu.core_type<tc>, window_params = [{transform_indices = @transform_0, window_bounds = array<i64: 1, 8, 16, 16>}, {pipeline_mode = #tpu.pipeline_mode<synchronous>, transform_indices = @transform_1, window_bounds = array<i64: 1, 16>}, {pipeline_mode = #tpu.pipeline_mode<synchronous>, transform_indices = @transform_2, window_bounds = array<i64: 1, 16>}, {transform_indices = @transform_3, window_bounds = array<i64: 1, 8, 16, 16>}]} {
    %c0 = arith.constant 0 : index
    %c0_0 = arith.constant 0 : index
    %0 = vector.load %arg3[%c0, %c0_0] : memref<1x16xf32, #tpu.memory_space<vmem>>, vector<1x16xf32>
    %1 = vector.shape_cast %0 : vector<1x16xf32> to vector<1x1x1x16xf32>
    %c0_1 = arith.constant 0 : index
    %c0_2 = arith.constant 0 : index
    %2 = vector.load %arg4[%c0_1, %c0_2] : memref<1x16xf32, #tpu.memory_space<vmem>>, vector<1x16xf32>
    %3 = vector.shape_cast %2 : vector<1x16xf32> to vector<1x1x1x16xf32>
    %c0_3 = arith.constant 0 : index
    %c0_4 = arith.constant 0 : index
    %c0_5 = arith.constant 0 : index
    %c0_6 = arith.constant 0 : index
    %4 = vector.load %arg2[%c0_3, %c0_4, %c0_5, %c0_6] : memref<1x8x16x16xf32, #tpu.memory_space<vmem>>, vector<1x8x16x16xf32>
    %5 = vector.broadcast %1 : vector<1x1x1x16xf32> to vector<1x8x16x16xf32>
    %6 = arith.mulf %4, %5 : vector<1x8x16x16xf32>
    %7 = vector.broadcast %3 : vector<1x1x1x16xf32> to vector<1x8x16x16xf32>
    %8 = arith.addf %6, %7 : vector<1x8x16x16xf32>
    %cst = arith.constant 0.000000e+00 : f32
    %9 = vector.broadcast %cst : f32 to vector<1x8x16x16xf32>
    %10 = arith.maximumf %8, %9 : vector<1x8x16x16xf32>
    %c0_7 = arith.constant 0 : index
    %c0_8 = arith.constant 0 : index
    %c0_9 = arith.constant 0 : index
    %c0_10 = arith.constant 0 : index
    %11 = vector.load %arg5[%c0_7, %c0_8, %c0_9, %c0_10] : memref<1x8x16x16xf32, #tpu.memory_space<vmem>>, vector<1x8x16x16xf32>
    tpu.vector_store %arg5[%c0_7, %c0_8, %c0_9, %c0_10], %10 {strides = array<i32>} : memref<1x8x16x16xf32, #tpu.memory_space<vmem>>, vector<1x8x16x16xf32>,
    return
  }
  func.func @transform_0(%arg0: i32, %arg1: i32) -> (i32, i32, i32, i32) {
    %c0_i32 = arith.constant 0 : i32
    %c0_i32_0 = arith.constant 0 : i32
    %c0_i32_1 = arith.constant 0 : i32
    return %arg0, %arg1, %c0_i32, %c0_i32_0 : i32, i32, i32, i32
  }
  func.func @transform_1(%arg0: i32, %arg1: i32) -> (i32, i32) {
    %c0_i32 = arith.constant 0 : i32
    %c0_i32_0 = arith.constant 0 : i32
    %c0_i32_1 = arith.constant 0 : i32
    return %c0_i32, %c0_i32_0 : i32, i32
  }
  func.func @transform_2(%arg0: i32, %arg1: i32) -> (i32, i32) {
    %c0_i32 = arith.constant 0 : i32
    %c0_i32_0 = arith.constant 0 : i32
    %c0_i32_1 = arith.constant 0 : i32
    return %c0_i32, %c0_i32_0 : i32, i32
  }
  func.func @transform_3(%arg0: i32, %arg1: i32) -> (i32, i32, i32, i32) {
    %c0_i32 = arith.constant 0 : i32
    %c0_i32_0 = arith.constant 0 : i32
    %c0_i32_1 = arith.constant 0 : i32
    return %arg0, %arg1, %c0_i32, %c0_i32_0 : i32, i32, i32, i32
  }
}

</mosaic_0001>

<bundles_post_ra>
// kernel: tile.18
= control target key start
LH: loop header
LB: loop body
LE: loop exit
PB: predicated region body
PF: predicated region fallthrough
CT: control target
= control target key end

     0   :  { %s22_s0 = inlined_call_operand.vmem [shape: f32[4], index: 0, kind: input, shape index: {}]   ;;  %s23_s1 = inlined_call_operand.vmem [shape: f32[4,4], index: 1, kind: output, shape index: {}]  }
   0x1   :  { %v4_v0 = vld [vmem:[%s22_s0] ss:$0 sm:$0xff] }
   0x2   :  { %5 = vst [vmem:[%s23_s1] sm:$0xf] %v4_v0 }

// kernel: tile.19
= control target key start
LH: loop header
LB: loop body
LE: loop exit
PB: predicated region body
PF: predicated region fallthrough
CT: control target
= control target key end

     0   :  { %vm7_vm0 = vcmask 31744   ;;  %s37_s8 = smov 4   ;;  %s38_s9 = smov 8   ;;  %vm13_vm1 = vcmask 130144   ;;  %vm19_vm2 = vcmask 97344   ;;  %vm25_vm3 = vcmask 64544   ;;  %s55_s0 = inlined_call_operand.vmem [shape: f32[4,4], index: 0, kind: input, shape index: {}]   ;;  %s56_s1 = inlined_call_operand.vmem [shape: f32[1,16], index: 1, kind: output, shape index: {}]  }
   0x1   :  { %v4_v0 = vld [vmem:[%s55_s0] sm:$0xf]  ;;  %s36_s0 = smov 12  }
   0x2   :  { %5 = vst [vmem:[#allocation1] sm:$0xf] %v4_v0 }
   0x9   :  { %v10_v1 = vld [vmem:[#allocation1 + $0x3] sm:$0x1]   ;;  %v22_v2 = vld [vmem:[#allocation1 + $0x1] sm:$0x1]   ;;  %v6_v3 = vld [vmem:[#allocation1] sm:$0x1]  }
   0xa   :  { %11 = vrot.lane.b32.xlu0 %v10_v1, %s36_s0  ;;  %23 = vrot.lane.b32.xlu1 %v22_v2, %s37_s8  ;;  %v16_v4 = vld [vmem:[#allocation1 + $0x2] sm:$0x1]   ;;  %8 = vst.msk [vmem:[#allocation0] sm:$0x1] %vm7_vm0, %v6_v3  }
   0xe   :  { %17 = vrot.lane.b32.xlu0 %v16_v4, %s38_s9 }
  0x7c   :  { %v12_v5 = vpop.permute.xlu0 %11   ;;  %v24_v6 = vpop.permute.xlu1 %23  }
  0x7d   :  { %14 = vst.msk [vmem:[#allocation0] sm:$0x1] %vm13_vm1, %v12_v5  }
  0x80   :  { %v18_v7 = vpop.permute.xlu0 %17  }
  0x81   :  { %20 = vst.msk [vmem:[#allocation0] sm:$0x1] %vm19_vm2, %v18_v7  }
  0x82   :  { %26 = vst.msk [vmem:[#allocation0] sm:$0x1] %vm25_vm3, %v24_v6  }
  0x89   :  { %v30_v8 = vld [vmem:[#allocation0] sm:$0x1] }
  0x8a   :  { %32 = vst [vmem:[%s56_s1] sm:$0x1] %v30_v8 }

// kernel: decoder_block_forward.5
= control target key start
LH: loop header
LB: loop body
LE: loop exit
PB: predicated region body
PF: predicated region fallthrough
CT: control target
= control target key end

     0   :  { %s526_s12 = smov 0   ;;  %s528_s13 = smov 0   ;;  %s671_s0 = inlined_call_operand.vmem [shape: f32[2,16,16,16], index: 0, kind: input, shape index: {}]   ;;  %s672_s1 = inlined_call_operand.vmem [shape: f32[1,16], index: 1, kind: input, shape index: {}]   ;;  %s673_s2 = inlined_call_operand.vmem [shape: f32[1,16], index: 2, kind: input, shape index: {}]   ;;  %s674_s3 = inlined_call_operand.vmem [shape: f32[2,16,16,16], index: 3, kind: output, shape index: {}]  }
   0x1   :  { %s530_s14 = smov 0   ;;  %s532_s15 = smov 0  }
   0x2   :  { %s534_s16 = smov 0  }
   0x3 LB: > { %s22_s17 = sadd.s32 1, %s496_s14  ;;  %s25_s18 = sadd.s32 1, %s500_s15  ;;  %s504_s16 = sphi %s534_s16, %s13_s16   ;;  %s500_s15 = sphi %s532_s15, %s678_s15   ;;  %s496_s14 = sphi %s530_s14, %s677_s14   ;;  %s492_s13 = sphi %s528_s13, %s676_s13   ;;  %s488_s12 = sphi %s526_s12, %s675_s12  }
   0x4   : > { %p23_p0 = scmp.ge.s32.totalorder %s22_s17, 2  ;;  %p413_p1 = scmp.ge.s32.totalorder %s504_s16, 1 }
   0x5   : > { %p159_p2 = scmp.lt.s32.totalorder %s504_s16, 5 }
   0x6   : > { %s680_s17 = smov (%p23_p0, %s22_s17), 0  ;;  %s682_s18 = smov (!%p23_p0, %s25_s18), %s500_s15 }
   0x7   : > { %p160_p3 = pnand %p413_p1, %p159_p2  ;;  %p27_p4 = scmp.ge.s32.totalorder %s682_s18, 2 }
   0x8   : > { %s414_s19 = sshll.u32 (!%p160_p3), %s488_s12, 3  ;;  %p194_p5 = scmp.lt.s32.totalorder (!%p160_p3), %s492_s13, 1  ;;  %v559_v0 = vld [vmem:[%s672_s1] ss:$0 sm:$0xff] (!%p160_p3)  ;;  %vm293_vm0 = vcmask (!%p160_p3), 130048  }
   0x9   : > { %s684_s18 = smov (%p27_p4, %s682_s18), 0  ;;  %163 = sbr.rel (%p160_p3) target bundleno = 39 (0x27), region = 32 }
   0xa   : > { %p196_p6 = scmp.lt.s32.totalorder (!%p160_p3), %s414_s19, 15  ;;  %v569_v1 = vld [vmem:[%s673_s2] ss:$0 sm:$0xff] (!%p160_p3) }
  0x10   : > { %s686_s13 = smov (!%p194_p5, %s492_s13), 1  ;;  %s688_s19 = smov (!%p196_p6, %s414_s19), 15 }
  0x11   : > { %s416_s20 = sshll.u32 %s686_s13, 5  ;;  %s415_s21 = sshll.u32 %s688_s19, 1 }
  0x12   : > { %s200_s22 = sadd.s32 %s416_s20, %s415_s21 }
  0x13   : > { %s417_s23 = sshll.u32 %s200_s22, 3 }
  0x14   : > { %s564_s28 = scalar_lea.vmem %s671_s0, %s417_s23  ;;  %s592_s6 = scalar_lea.vmem %s674_s3, %s417_s23 }
  0x15   : > { %v217_v2 = vld [vmem:[%s564_s28] sm:$0xff]  ;;  %v218_v3 = vld [vmem:[%s564_s28 + $0x8] sm:$0xff]  ;;  %v219_v4 = vld [vmem:[%s564_s28 + $0x10] sm:$0xff] }
  0x16   : > { %v239_v5 = vmul.f32 %v559_v0, %v217_v2  ;;  %v240_v6 = vmul.f32 %v559_v0, %v218_v3  ;;  %v241_v7 = vmul.f32 %v559_v0, %v219_v4  ;;  %v220_v8 = vld [vmem:[%s564_s28 + $0x18] sm:$0xff]  ;;  %v221_v9 = vld [vmem:[%s564_s28 + $0x20] sm:$0xff]  ;;  %v222_v10 = vld [vmem:[%s564_s28 + $0x28] sm:$0xff] }
  0x17   : > { %v242_v11 = vmul.f32 %v559_v0, %v220_v8  ;;  %v243_v12 = vmul.f32 %v559_v0, %v221_v9  ;;  %v244_v13 = vmul.f32 %v559_v0, %v222_v10  ;;  %v223_v14 = vld [vmem:[%s564_s28 + $0x30] sm:$0xff]  ;;  %v224_v15 = vld [vmem:[%s564_s28 + $0x38] sm:$0xff]  ;;  %v225_v24 = vld [vmem:[%s564_s28 + $0x40] sm:$0xff] }
  0x18   : > { %v261_v16 = vadd.f32 %v569_v1, %v239_v5  ;;  %v262_v17 = vadd.f32 %v569_v1, %v240_v6  ;;  %v263_v18 = vadd.f32 %v569_v1, %v241_v7  ;;  %v245_v19 = vmul.f32 %v559_v0, %v223_v14  ;;  %v226_v25 = vld [vmem:[%s564_s28 + $0x48] sm:$0xff]  ;;  %v227_v26 = vld [vmem:[%s564_s28 + $0x50] sm:$0xff]  ;;  %v228_v31 = vld [vmem:[%s564_s28 + $0x58] sm:$0xff] }
  0x19   : > { %v264_v20 = vadd.f32 %v569_v1, %v242_v11  ;;  %v265_v21 = vadd.f32 %v569_v1, %v243_v12  ;;  %v266_v22 = vadd.f32 %v569_v1, %v244_v13  ;;  %v246_v23 = vmul.f32 %v559_v0, %v224_v15  ;;  %v229_v32 = vld [vmem:[%s564_s28 + $0x60] sm:$0xff]  ;;  %v230_v33 = vld [vmem:[%s564_s28 + $0x68] sm:$0xff]  ;;  %v231_v38 = vld [vmem:[%s564_s28 + $0x70] sm:$0xff] }
  0x1a   : > { %v277_v27 = vmax.f32 %v261_v16, 0.0  ;;  %v278_v28 = vmax.f32 %v262_v17, 0.0  ;;  %v279_v29 = vmax.f32 %v263_v18, 0.0  ;;  %v267_v30 = vadd.f32 %v569_v1, %v245_v19  ;;  %v232_v43 = vld [vmem:[%s564_s28 + $0x78] sm:$0xff] }
  0x1b   : > { %v280_v34 = vmax.f32 %v264_v20, 0.0  ;;  %v281_v35 = vmax.f32 %v265_v21, 0.0  ;;  %v282_v36 = vmax.f32 %v266_v22, 0.0  ;;  %v268_v37 = vadd.f32 %v569_v1, %v246_v23 }
  0x1c   : > { %294 = vst.msk [vmem:[%s592_s6] sm:$0xff] %vm293_vm0, %v277_v27  ;;  %295 = vst.msk [vmem:[%s592_s6 + $0x8] sm:$0xff] %vm293_vm0, %v278_v28  ;;  %v283_v39 = vmax.f32 %v267_v30, 0.0  ;;  %v247_v40 = vmul.f32 %v559_v0, %v225_v24  ;;  %v248_v41 = vmul.f32 %v559_v0, %v226_v25  ;;  %v249_v42 = vmul.f32 %v559_v0, %v227_v26 }
  0x1d   : > { %296 = vst.msk [vmem:[%s592_s6 + $0x10] sm:$0xff] %vm293_vm0, %v279_v29  ;;  %297 = vst.msk [vmem:[%s592_s6 + $0x18] sm:$0xff] %vm293_vm0, %v280_v34  ;;  %v284_v44 = vmax.f32 %v268_v37, 0.0  ;;  %v250_v45 = vmul.f32 %v559_v0, %v228_v31  ;;  %v251_v46 = vmul.f32 %v559_v0, %v229_v32  ;;  %v252_v47 = vmul.f32 %v559_v0, %v230_v33 }
  0x1e   : > { %298 = vst.msk [vmem:[%s592_s6 + $0x20] sm:$0xff] %vm293_vm0, %v281_v35  ;;  %299 = vst.msk [vmem:[%s592_s6 + $0x28] sm:$0xff] %vm293_vm0, %v282_v36  ;;  %v269_v48 = vadd.f32 %v569_v1, %v247_v40  ;;  %v270_v49 = vadd.f32 %v569_v1, %v248_v41  ;;  %v271_v50 = vadd.f32 %v569_v1, %v249_v42 }
  0x1f   : > { %300 = vst.msk [vmem:[%s592_s6 + $0x30] sm:$0xff] %vm293_vm0, %v283_v39  ;;  %v253_v51 = vmul.f32 %v559_v0, %v231_v38  ;;  %301 = vst.msk [vmem:[%s592_s6 + $0x38] sm:$0xff] %vm293_vm0, %v284_v44  ;;  %v272_v52 = vadd.f32 %v569_v1, %v250_v45  ;;  %v273_v53 = vadd.f32 %v569_v1, %v251_v46 }
  0x20   : > { %v274_v54 = vadd.f32 %v569_v1, %v252_v47  ;;  %v254_v55 = vmul.f32 %v559_v0, %v232_v43  ;;  %v285_v56 = vmax.f32 %v269_v48, 0.0  ;;  %v286_v57 = vmax.f32 %v270_v49, 0.0 }
  0x21   : > { %v287_v58 = vmax.f32 %v271_v50, 0.0  ;;  %v275_v59 = vadd.f32 %v569_v1, %v253_v51  ;;  %v288_v60 = vmax.f32 %v272_v52, 0.0  ;;  %v289_v61 = vmax.f32 %v273_v53, 0.0 }
  0x22   : > { %v290_v62 = vmax.f32 %v274_v54, 0.0  ;;  %v276_v63 = vadd.f32 %v569_v1, %v254_v55  ;;  %302 = vst.msk [vmem:[%s592_s6 + $0x40] sm:$0xff] %vm293_vm0, %v285_v56  ;;  %303 = vst.msk [vmem:[%s592_s6 + $0x48] sm:$0xff] %vm293_vm0, %v286_v57 }
  0x23   : > { %304 = vst.msk [vmem:[%s592_s6 + $0x50] sm:$0xff] %vm293_vm0, %v287_v58  ;;  %v291_v2 = vmax.f32 %v275_v59, 0.0  ;;  %305 = vst.msk [vmem:[%s592_s6 + $0x58] sm:$0xff] %vm293_vm0, %v288_v60 }
  0x24   : > { %306 = vst.msk [vmem:[%s592_s6 + $0x60] sm:$0xff] %vm293_vm0, %v289_v61  ;;  %307 = vst.msk [vmem:[%s592_s6 + $0x68] sm:$0xff] %vm293_vm0, %v290_v62  ;;  %v292_v0 = vmax.f32 %v276_v63, 0.0 }
  0x25   : > { %308 = vst.msk [vmem:[%s592_s6 + $0x70] sm:$0xff] %vm293_vm0, %v291_v2 }
  0x26   : > { %309 = vst.msk [vmem:[%s592_s6 + $0x78] sm:$0xff] %vm293_vm0, %v292_v0 }
  0x27 PF: > { %s13_s16 = sadd.s32 1, %s504_s16   ;;  %s675_s12 = smov %s496_s14 }
  0x28   : > { %p10_p7 = scmp.ge.s32.totalorder %s13_s16, 6   ;;  %s676_s13 = smov %s500_s15 }
  0x29   : > { %s677_s14 = smov %s680_s17  ;;  %s678_s15 = smov %s684_s18 }
  0x2a   :  { %12 = sbr.rel (!%p10_p7) target bundleno = 3 (0x3), region = 62 }

// kernel: decoder_block_forward.4
= control target key start
LH: loop header
LB: loop body
LE: loop exit
PB: predicated region body
PF: predicated region fallthrough
CT: control target
= control target key end

     0   :  { %s1935_s21 = smov 0   ;;  %s1937_s22 = smov 0   ;;  %s2372_s0 = inlined_call_operand.vmem [shape: f32[2,16,16,8], index: 0, kind: input, shape index: {}, may-alias: {0,1}]   ;;  %s2373_s1 = inlined_call_operand.vmem [shape: f32[2,16,16,8], index: 1, kind: input, shape index: {}, may-alias: {0,1}]   ;;  %s2374_s2 = inlined_call_operand.vmem [shape: f32[1,8], index: 2, kind: input, shape index: {}]   ;;  %s2375_s3 = inlined_call_operand.vmem [shape: f32[1,8], index: 3, kind: input, shape index: {}]   ;;  %s2376_s4 = inlined_call_operand.vmem [shape: f32[4,8,16], index: 4, kind: input, shape index: {}]   ;;  %s2377_s5 = inlined_call_operand.vmem [shape: f32[2,16,16,16], index: 5, kind: output, shape index: {0}]   ;;  %s2378_s6 = inlined_call_operand.vmem [shape: f32[2,2,2,16], index: 6, kind: output, shape index: {1}]  }
   0x1   :  { %s1939_s23 = smov 0   ;;  %s1941_s24 = smov 0  }
   0x2   :  { %s1943_s25 = smov 0  }
   0x3 LB: > { %s26_s26 = sadd.s32 1, %s1889_s23  ;;  %s29_s27 = sadd.s32 1, %s1893_s24  ;;  %s1897_s25 = sphi %s1943_s25, %s17_s25   ;;  %s1893_s24 = sphi %s1941_s24, %s2383_s24   ;;  %s1889_s23 = sphi %s1939_s23, %s2382_s23   ;;  %s1885_s22 = sphi %s1937_s22, %s2381_s22   ;;  %s1881_s21 = sphi %s1935_s21, %s2380_s21  }
   0x4   : > { %p27_p0 = scmp.ge.s32.totalorder %s26_s26, 2  ;;  %p1503_p1 = scmp.ge.s32.totalorder %s1897_s25, 1 }
   0x5   : > { %p271_p2 = scmp.lt.s32.totalorder %s1897_s25, 5 }
   0x6   : > { %s2385_s26 = smov (%p27_p0, %s26_s26), 0  ;;  %s2387_s27 = smov (!%p27_p0, %s29_s27), %s1893_s24 }
   0x7   : > { %p272_p3 = pnand %p1503_p1, %p271_p2  ;;  %p31_p4 = scmp.ge.s32.totalorder %s2387_s27, 2 }
   0x8   : > { %v1556_v0 = vld [vmem:[%s2376_s4 + $0x10] sm:$0xff] (!%p272_p3)  ;;  %s1504_s30 = sshll.u32 (!%p272_p3), %s1881_s21, 3  ;;  %p333_p5 = scmp.lt.s32.totalorder (!%p272_p3), %s1885_s22, 1  ;;  %v1523_v1 = vld [vmem:[%s2376_s4 + $0x8] sm:$0xff] (!%p272_p3)  ;;  %v1977_v2 = vld [vmem:[%s2376_s4] sm:$0xff] (!%p272_p3)  ;;  %vm524_vm0 = vcmask (!%p272_p3), 64512  }
   0x9   : > { %s2389_s27 = smov (%p31_p4, %s2387_s27), 0  ;;  %275 = sbr.rel (%p272_p3) target bundleno = 331 (0x14b), region = 40 }
   0xa   : > { %1718 = vmatprep.subr.mxu0 (!%p272_p3), %v1556_v0  ;;  %p335_p6 = scmp.lt.s32.totalorder (!%p272_p3), %s1504_s30, 15  ;;  %1666 = vmatprep.subr.mxu1 (!%p272_p3), %v1523_v1  ;;  %v1984_v3 = vld [vmem:[%s2376_s4 + $0x18] sm:$0xff] (!%p272_p3)  ;;  %s1597_s15 = sadd.s32 (!%p272_p3), 8, %s1504_s30  ;;  %v2001_v4 = vld [vmem:[%s2374_s2] ss:$0 sm:$0xff] (!%p272_p3)  ;;  %v1899_v33 = vmov (!%p272_p3), 0.0  }
   0xb   : > { %1719 = vmatpush3.msra.mxu0 (!%p272_p3), %v1556_v0  ;;  %1667 = vmatpush3.msra.mxu1 (!%p272_p3), %v1523_v1  ;;  %p1989_p7 = scmp.lt.s32.totalorder (!%p272_p3), %s1597_s15, 15  ;;  %v2013_v5 = vld [vmem:[%s2375_s3] ss:$0 sm:$0xff] (!%p272_p3)  ;;  %v2056_v34 = vrot.slane (!%p272_p3), %v1899_v33, 1  ;;  %vm488_vm1 = vcmask (!%p272_p3), 1046528   ;;  %p465_p8 = scmp.eq.s32.totalorder (!%p272_p3), %s1881_s21, 1 }
   0xc   : > { %1744 = vmatprep.subr.mxu0 (!%p272_p3), %v1984_v3  ;;  %1692 = vmatprep.subr.mxu1 (!%p272_p3), %v1977_v2  ;;  %vm1219_vm2 = vcmask (!%p272_p3), 130048   ;;  %p373_p9 = scmp.lt.s32.totalorder (!%p272_p3), %s1881_s21, 1  ;;  %vm1326_vm3 = vcmask (!%p272_p3), 1040384   ;;  %vm1328_vm4 = vcmask (!%p272_p3), 123904  }
  0x10   : > { %s2391_s22 = smov (!%p333_p5, %s1885_s22), 1  ;;  %s2393_s15 = smov (!%p1989_p7, %s1597_s15), 15 }
  0x11   : > { %s336_s13 = scalar_select %p335_p6, %s1504_s30, 15 }
  0x12   : > { %s1506_s14 = sshll.u32 %s2391_s22, 5  ;;  %s2395_s15 = smov (!%p1989_p7, %s2393_s15), 15 }
  0x13   : > { %s1505_s16 = sshll.u32 %s336_s13, 1  ;;  %s1512_s10 = sshll.u32 %s2395_s15, 1 }
  0x14   : > { %s1995_s18 = sadd.s32 %s1506_s14, %s1505_s16  ;;  %s2053_s11 = sadd.s32 %s1512_s10, %s1506_s14 }
  0x15   : > { %s1507_s19 = sshll.u32 %s1995_s18, 3  ;;  %s1514_s12 = sshll.u32 %s2053_s11, 3 }
  0x16   : > { %s2008_s7 = scalar_lea.vmem %s2372_s0, %s1507_s19  ;;  %s2100_s15 = scalar_lea.vmem %s2373_s1, %s1514_s12 }
  0x17   : > { %v383_v6 = vld [vmem:[%s2008_s7 + $0x10] sm:$0xff]  ;;  %v384_v7 = vld [vmem:[%s2008_s7 + $0x18] sm:$0xff]  ;;  %v381_v8 = vld [vmem:[%s2008_s7] sm:$0xff]  ;;  %s466_s16 = scalar_select %p465_p8, 0.0, 1.0 }
  0x18   : > { %v405_v9 = vmul.f32 %v2001_v4, %v383_v6  ;;  %v406_v10 = vmul.f32 %v2001_v4, %v384_v7  ;;  %v382_v11 = vld [vmem:[%s2008_s7 + $0x8] sm:$0xff]  ;;  %v403_v12 = vmul.f32 %v2001_v4, %v381_v8  ;;  %v385_v13 = vld [vmem:[%s2008_s7 + $0x20] sm:$0xff]  ;;  %v387_v18 = vld [vmem:[%s2008_s7 + $0x30] sm:$0xff]  ;;  %s2285_s28 = scalar_lea.vmem %s2377_s5, %s1507_s19  ;;  %s2397_s21 = smov (!%p373_p9, %s1881_s21), 1 }
  0x19   : > { %v386_v14 = vld [vmem:[%s2008_s7 + $0x28] sm:$0xff]  ;;  %v404_v15 = vmul.f32 %v2001_v4, %v382_v11  ;;  %v407_v16 = vmul.f32 %v2001_v4, %v385_v13  ;;  %v388_v19 = vld [vmem:[%s2008_s7 + $0x38] sm:$0xff]  ;;  %v409_v23 = vmul.f32 %v2001_v4, %v387_v18  ;;  %v389_v36 = vld [vmem:[%s2008_s7 + $0x40] sm:$0xff]  ;;  %s1519_s18 = sshll.u32 %s2391_s22, 1 }
  0x1a   : > { %v408_v17 = vmul.f32 %v2001_v4, %v386_v14  ;;  %v427_v20 = vadd.f32 %v2013_v5, %v405_v9  ;;  %v428_v21 = vadd.f32 %v2013_v5, %v406_v10  ;;  %v2036_v22 = vadd.f32 %v2013_v5, %v403_v12  ;;  %v390_v43 = vld [vmem:[%s2008_s7 + $0x48] sm:$0xff]  ;;  %v391_v44 = vld [vmem:[%s2008_s7 + $0x50] sm:$0xff]  ;;  %v392_v48 = vld [vmem:[%s2008_s7 + $0x58] sm:$0xff]  ;;  %s376_s19 = sadd.s32 %s1519_s18, %s2397_s21 }
  0x1b   : > { %v2040_v24 = vadd.f32 %v2013_v5, %v404_v15  ;;  %v429_v25 = vadd.f32 %v2013_v5, %v407_v16  ;;  %v410_v27 = vmul.f32 %v2001_v4, %v388_v19  ;;  %v431_v31 = vadd.f32 %v2013_v5, %v409_v23  ;;  %v393_v53 = vld [vmem:[%s2008_s7 + $0x60] sm:$0xff]  ;;  %v394_v63 = vld [vmem:[%s2008_s7 + $0x68] sm:$0xff]  ;;  %v395_v6 = vld [vmem:[%s2008_s7 + $0x70] sm:$0xff]  ;;  %s1520_s29 = sshll.u32 %s376_s19, 1 }
  0x1c   : > { %v430_v26 = vadd.f32 %v2013_v5, %v408_v17  ;;  %v2045_v28 = vmax.f32 %v427_v20, 0.0  ;;  %v2047_v29 = vmax.f32 %v428_v21, 0.0  ;;  %v441_v30 = vmax.f32 %v2036_v22, 0.0  ;;  %v457_v7 = vld [vmem:[%s2100_s15] sm:$0xff]  ;;  %v396_v15 = vld [vmem:[%s2008_s7 + $0x78] sm:$0xff]  ;;  %v458_v20 = vld [vmem:[%s2100_s15 + $0x8] sm:$0xff]  ;;  %s378_s8 = scalar_lea.vmem %s2378_s6, %s1520_s29 }
  0x1d   : > { %v442_v32 = vmax.f32 %v2040_v24, 0.0  ;;  %v2058_v35 = vmax.f32 %v429_v25, 0.0  ;;  %v432_v42 = vadd.f32 %v2013_v5, %v410_v27  ;;  %v2080_v45 = vmax.f32 %v431_v31, 0.0 }
  0x1e   : > { %1720 = vmatprep.mubr.msk.f32.mxu0 %vm524_vm0, %v2045_v28  ;;  %v489_v37 = vrot.slane %v441_v30, 1  ;;  %v494_v38 = vrot.slane %v2045_v28, 1  ;;  %v495_v39 = vrot.slane %v2047_v29, 1  ;;  %v2071_v41 = vmax.f32 %v430_v26, 0.0 }
  0x1f   : > { %1721 = vmatmul.mubr.msk.f32.vlgmr.msra.gmra.mrb[0].mxu0 %vm524_vm0, %v2047_v29  ;;  %v490_v40 = vrot.slane %v442_v32, 1  ;;  %v498_v46 = vrot.slane %v2058_v35, 1  ;;  %v411_v47 = vmul.f32 %v2001_v4, %v389_v36  ;;  %v412_v55 = vmul.f32 %v2001_v4, %v390_v43 }
  0x20   : > { %1723 = vmatprep.mubr.msk.f32.mxu0 %vm524_vm0, %v2058_v35  ;;  %1745 = vmatpush3.msra.mxu0 %v1984_v3  ;;  %v2089_v51 = vsel %vm488_vm1, %v494_v38, %v495_v39  ;;  %v499_v52 = vrot.slane %v2071_v41, 1  ;;  %v413_v56 = vmul.f32 %v2001_v4, %v391_v44  ;;  %v2105_v57 = vmax.f32 %v432_v42, 0.0 }
  0x21   : > { %v491_v49 = vsel %vm488_vm1, %v489_v37, %v490_v40  ;;  %v493_v50 = vsel %vm488_vm1, %v490_v40, %v2056_v34  ;;  %v433_v54 = vadd.f32 %v2013_v5, %v411_v47  ;;  %v414_v58 = vmul.f32 %v2001_v4, %v392_v48 }
  0x22   : > { %1668 = vmatprep.mubr.msk.f32.mxu1 %vm524_vm0, %v491_v49  ;;  %v2113_v59 = vsel %vm488_vm1, %v495_v39, %v2056_v34  ;;  %v434_v61 = vadd.f32 %v2013_v5, %v412_v55  ;;  %v415_v62 = vmul.f32 %v2001_v4, %v393_v53  ;;  %v2123_v0 = vsel %vm488_vm1, %v498_v46, %v499_v52 }
  0x23   : > { %1669 = vmatmul.mubr.msk.f32.vlgmr.msra.gmra.mrb[0].mxu1 %vm524_vm0, %v493_v50  ;;  %1724 = vmatmul.mubr.msk.f32.gmra.mrb[2].mxu0 %vm524_vm0, %v2071_v41  ;;  %v2115_v60 = vmax.f32 %v433_v54, 0.0  ;;  %v502_v1 = vrot.slane %v2080_v45, 1  ;;  %v435_v3 = vadd.f32 %v2013_v5, %v413_v56  ;;  %v2136_v8 = vsel %vm488_vm1, %v499_v52, %v2056_v34 }
  0x24   : > { %1693 = vmatpush3.msra.mxu1 %v1977_v2  ;;  %1671 = vmatprep.mubr.msk.f32.mxu1 %vm524_vm0, %v2089_v51  ;;  %v503_v2 = vrot.slane %v2105_v57, 1  ;;  %v2138_v9 = vmax.f32 %v434_v61, 0.0  ;;  %v436_v10 = vadd.f32 %v2013_v5, %v414_v58  ;;  %v416_v11 = vmul.f32 %v2001_v4, %v394_v63 }
  0x25   : > { %1726 = vmatprep.mubr.msk.f32.mxu0 %vm524_vm0, %v2080_v45  ;;  %v2146_v12 = vmax.f32 %v435_v3, 0.0  ;;  %v437_v13 = vadd.f32 %v2013_v5, %v415_v62  ;;  %v417_v14 = vmul.f32 %v2001_v4, %v395_v6  ;;  %v459_v16 = vmul.f32 %v2001_v4, %v457_v7 }
  0x26   : > { %v2153_v17 = vsel %vm488_vm1, %v502_v1, %v503_v2  ;;  %v506_v18 = vrot.slane %v2115_v60, 1  ;;  %v507_v19 = vrot.slane %v2138_v9, 1  ;;  %v505_v21 = vsel %vm488_vm1, %v503_v2, %v2056_v34 }
  0x27   : > { %1672 = vmatmul.mubr.msk.f32.gmra.mrb[2].mxu1 %vm524_vm0, %v2113_v59  ;;  %1727 = vmatmul.mubr.msk.f32.gmra.mrb[4].mxu0 %vm524_vm0, %v2105_v57  ;;  %v2165_v23 = vmax.f32 %v436_v10, 0.0  ;;  %v438_v25 = vadd.f32 %v2013_v5, %v416_v11  ;;  %v418_v26 = vmul.f32 %v2001_v4, %v396_v15  ;;  %v2173_v27 = vmax.f32 %v437_v13, 0.0 }
  0x28   : > { %1674 = vmatprep.mubr.msk.f32.mxu1 %vm524_vm0, %v2123_v0  ;;  %1729 = vmatprep.mubr.msk.f32.mxu0 %vm524_vm0, %v2115_v60  ;;  %v439_v31 = vadd.f32 %v2013_v5, %v417_v14  ;;  %v461_v33 = vadd.f32 %v2013_v5, %v459_v16  ;;  %v460_v36 = vmul.f32 %v2001_v4, %v458_v20  ;;  %v510_v38 = vrot.slane %v2146_v12, 1 }
  0x29   : > { %v508_v37 = vsel %vm488_vm1, %v506_v18, %v507_v19  ;;  %v511_v39 = vrot.slane %v2165_v23, 1  ;;  %v2186_v40 = vmax.f32 %v438_v25, 0.0  ;;  %v440_v42 = vadd.f32 %v2013_v5, %v418_v26 }
  0x2a   : > { %v462_v43 = vadd.f32 %v2013_v5, %v460_v36  ;;  %v509_v4 = vsel %vm488_vm1, %v507_v19, %v2056_v34  ;;  %v2195_v44 = vmax.f32 %v439_v31, 0.0  ;;  %v463_v46 = vmax.f32 %v461_v33, 0.0 }
  0x2b   : > { %1675 = vmatmul.mubr.msk.f32.gmra.mrb[4].mxu1 %vm524_vm0, %v2136_v8  ;;  %1730 = vmatmul.mubr.msk.f32.gmra.mrb[6].mxu0 %vm524_vm0, %v2138_v9  ;;  %v512_v47 = vsel %vm488_vm1, %v510_v38, %v511_v39  ;;  %v514_v48 = vrot.slane %v2173_v27, 1  ;;  %v515_v49 = vrot.slane %v2186_v40, 1  ;;  %v467_v50 = vstv %s466_s16 }
  0x2c   : > { %1677 = vmatprep.mubr.msk.f32.mxu1 %vm524_vm0, %v2153_v17  ;;  %1732 = vmatprep.mubr.msk.f32.mxu0 %vm524_vm0, %v2146_v12  ;;  %v456_v5 = vmax.f32 %v440_v42, 0.0  ;;  %v464_v52 = vmax.f32 %v462_v43, 0.0  ;;  %v513_v53 = vsel %vm488_vm1, %v511_v39, %v2056_v34  ;;  %v468_v54 = vmul.f32 %v467_v50, %v463_v46 }
  0x2d   : > { %v516_v55 = vsel %vm488_vm1, %v514_v48, %v515_v49  ;;  %v518_v56 = vrot.slane %v2195_v44, 1  ;;  %v517_v62 = vsel %vm488_vm1, %v515_v49, %v2056_v34 }
  0x2e   : > { %v519_v58 = vrot.slane %v456_v5, 1  ;;  %v469_v61 = vmul.f32 %v467_v50, %v464_v52  ;;  %v1048_v22 = vrot.slane %v468_v54, 1 }
  0x2f   : > { %1678 = vmatmul.mubr.msk.f32.gmra.mrb[6].mxu1 %vm524_vm0, %v505_v21  ;;  %1733 = vmatmul.mubr.msk.f32.gmra.mrb[8].mxu0 %vm524_vm0, %v2165_v23 }
  0x30   : > { %1680 = vmatprep.mubr.msk.f32.mxu1 %vm524_vm0, %v508_v37  ;;  %1735 = vmatprep.mubr.msk.f32.mxu0 %vm524_vm0, %v2173_v27  ;;  %v520_v63 = vsel %vm488_vm1, %v518_v56, %v519_v58  ;;  %v521_v1 = vsel %vm488_vm1, %v519_v58, %v2056_v34  ;;  %v1049_v24 = vrot.slane %v469_v61, 1 }
  0x33   : > { %1681 = vmatmul.mubr.msk.f32.gmra.mrb[8].mxu1 %vm524_vm0, %v509_v4  ;;  %1736 = vmatmul.mubr.msk.f32.gmra.mrb[10].mxu0 %vm524_vm0, %v2186_v40 }
  0x34   : > { %1683 = vmatprep.mubr.msk.f32.mxu1 %vm524_vm0, %v512_v47  ;;  %1738 = vmatprep.mubr.msk.f32.mxu0 %vm524_vm0, %v2195_v44 }
  0x37   : > { %1684 = vmatmul.mubr.msk.f32.gmra.mrb[10].mxu1 %vm524_vm0, %v513_v53  ;;  %1739 = vmatmul.mubr.msk.f32.gmra.mrb[12].mxu0 %vm524_vm0, %v456_v5 }
  0x38   : > { %1686 = vmatprep.mubr.msk.f32.mxu1 %vm524_vm0, %v516_v55  ;;  %1741 = vmatprep.mubr.msk.f32.mxu0 %vm524_vm0, %v468_v54 }
  0x3b   : > { %1687 = vmatmul.mubr.msk.f32.gmra.mrb[12].mxu1 %vm524_vm0, %v517_v62  ;;  %1742 = vmatmul.mubr.msk.f32.gmra.mrb[14].mxu0 %vm524_vm0, %v469_v61 }
  0x3c   : > { %1689 = vmatprep.mubr.msk.f32.mxu1 %vm524_vm0, %v520_v63  ;;  %1746 = vmatprep.mubr.msk.f32.mxu0 %vm524_vm0, %v2089_v51 }
  0x3f   : > { %1690 = vmatmul.mubr.msk.f32.gmra.mrb[14].mxu1 %vm524_vm0, %v521_v1  ;;  %1747 = vmatmul.mubr.msk.f32.vlgmr.msra.gmra.mrb[0].mxu0 %vm524_vm0, %v2113_v59 }
  0x40   : > { %1694 = vmatprep.mubr.msk.f32.mxu1 %vm524_vm0, %v441_v30  ;;  %1749 = vmatprep.mubr.msk.f32.mxu0 %vm524_vm0, %v2123_v0 }
  0x43   : > { %1695 = vmatmul.mubr.msk.f32.vlgmr.msra.gmra.mrb[0].mxu1 %vm524_vm0, %v442_v32  ;;  %1750 = vmatmul.mubr.msk.f32.gmra.mrb[2].mxu0 %vm524_vm0, %v2136_v8 }
  0x44   : > { %1697 = vmatprep.mubr.msk.f32.mxu1 %vm524_vm0, %v2045_v28  ;;  %1752 = vmatprep.mubr.msk.f32.mxu0 %vm524_vm0, %v2153_v17  ;;  %v1050_v28 = vsel %vm488_vm1, %v1048_v22, %v1049_v24 }
  0x47   : > { %1698 = vmatmul.mubr.msk.f32.gmra.mrb[2].mxu1 %vm524_vm0, %v2047_v29  ;;  %1753 = vmatmul.mubr.msk.f32.gmra.mrb[4].mxu0 %vm524_vm0, %v505_v21  ;;  %v1051_v29 = vsel %vm488_vm1, %v1049_v24, %v2056_v34 }
  0x48   : > { %1700 = vmatprep.mubr.msk.f32.mxu1 %vm524_vm0, %v2058_v35  ;;  %1755 = vmatprep.mubr.msk.f32.mxu0 %vm524_vm0, %v508_v37 }
  0x4b   : > { %1701 = vmatmul.mubr.msk.f32.gmra.mrb[4].mxu1 %vm524_vm0, %v2071_v41  ;;  %1756 = vmatmul.mubr.msk.f32.gmra.mrb[6].mxu0 %vm524_vm0, %v509_v4 }
  0x4c   : > { %1703 = vmatprep.mubr.msk.f32.mxu1 %vm524_vm0, %v2080_v45  ;;  %1758 = vmatprep.mubr.msk.f32.mxu0 %vm524_vm0, %v512_v47 }
  0x4f   : > { %1704 = vmatmul.mubr.msk.f32.gmra.mrb[6].mxu1 %vm524_vm0, %v2105_v57  ;;  %1759 = vmatmul.mubr.msk.f32.gmra.mrb[8].mxu0 %vm524_vm0, %v513_v53 }
  0x50   : > { %1706 = vmatprep.mubr.msk.f32.mxu1 %vm524_vm0, %v2115_v60  ;;  %1761 = vmatprep.mubr.msk.f32.mxu0 %vm524_vm0, %v516_v55 }
  0x53   : > { %1707 = vmatmul.mubr.msk.f32.gmra.mrb[8].mxu1 %vm524_vm0, %v2138_v9  ;;  %1762 = vmatmul.mubr.msk.f32.gmra.mrb[10].mxu0 %vm524_vm0, %v517_v62 }
  0x54   : > { %1709 = vmatprep.mubr.msk.f32.mxu1 %vm524_vm0, %v2146_v12  ;;  %1764 = vmatprep.mubr.msk.f32.mxu0 %vm524_vm0, %v520_v63 }
  0x57   : > { %1710 = vmatmul.mubr.msk.f32.gmra.mrb[10].mxu1 %vm524_vm0, %v2165_v23  ;;  %1765 = vmatmul.mubr.msk.f32.gmra.mrb[12].mxu0 %vm524_vm0, %v521_v1 }
  0x58   : > { %1712 = vmatprep.mubr.msk.f32.mxu1 %vm524_vm0, %v2173_v27  ;;  %1767 = vmatprep.mubr.msk.f32.mxu0 %vm524_vm0, %v1050_v28 }
  0x5b   : > { %1713 = vmatmul.mubr.msk.f32.gmra.mrb[12].mxu1 %vm524_vm0, %v2186_v40  ;;  %1768 = vmatmul.mubr.msk.f32.gmra.mrb[14].mxu0 %vm524_vm0, %v1051_v29 }
  0x5c   : > { %1715 = vmatprep.mubr.msk.f32.mxu1 %vm524_vm0, %v2195_v44 }
  0x5f   : > { %1716 = vmatmul.mubr.msk.f32.gmra.mrb[14].mxu1 %vm524_vm0, %v456_v5 }
 0x112   : > { %v1748_v30 = vpop.f32.mrb[0].mxu0 }
 0x113   : > { %v1124_v32 = vpop.f32.mrb[1].mxu0 }
 0x116   : > { %v1696_v34 = vpop.f32.mrb[0].mxu1  ;;  %v1751_v35 = vpop.f32.mrb[2].mxu0 }
 0x117   : > { %v1770_v41 = vadd.f32 %v1748_v30, %v1696_v34  ;;  %v800_v45 = vpop.f32.mrb[1].mxu1  ;;  %v1134_v51 = vpop.f32.mrb[3].mxu0 }
 0x118   : > { %v1771_v57 = vadd.f32 %v1124_v32, %v800_v45 }
 0x119   : > { %1221 = vst.msk [vmem:[%s2285_s28 + $0x8] sm:$0xff] %vm1219_vm2, %v1770_v41  ;;  %v1237_v59 = vsel %vm1219_vm2, %v1770_v41, 0.0  ;;  %v1274_v60 = vmul.f32 %v1770_v41, %v1770_v41 }
 0x11a   : > { %1220 = vst.msk [vmem:[%s2285_s28] sm:$0xff] %vm1219_vm2, %v1771_v57  ;;  %v1236_v0 = vsel %vm1219_vm2, %v1771_v57, 0.0  ;;  %v1273_v2 = vmul.f32 %v1771_v57, %v1771_v57  ;;  %v1699_v3 = vpop.f32.mrb[2].mxu1  ;;  %v1754_v6 = vpop.f32.mrb[4].mxu0 }
 0x11b   : > { %v1290_v7 = vsel %vm1219_vm2, %v1274_v60, 0.0  ;;  %v1238_v8 = vadd.f32 %v1237_v59, %v1236_v0  ;;  %v1772_v9 = vadd.f32 %v1751_v35, %v1699_v3  ;;  %v810_v10 = vpop.f32.mrb[3].mxu1  ;;  %v1144_v11 = vpop.f32.mrb[5].mxu0 }
 0x11c   : > { %v1289_v12 = vsel %vm1219_vm2, %v1273_v2, 0.0  ;;  %v1773_v13 = vadd.f32 %v1134_v51, %v810_v10 }
 0x11d   : > { %v1291_v14 = vadd.f32 %v1290_v7, %v1289_v12  ;;  %1223 = vst.msk [vmem:[%s2285_s28 + $0x18] sm:$0xff] %vm1219_vm2, %v1772_v9  ;;  %v1276_v15 = vmul.f32 %v1772_v9, %v1772_v9  ;;  %v1241_v26 = vsel %vm1219_vm2, %v1772_v9, 0.0 }
 0x11e   : > { %1222 = vst.msk [vmem:[%s2285_s28 + $0x10] sm:$0xff] %vm1219_vm2, %v1773_v13  ;;  %v1239_v16 = vsel %vm1219_vm2, %v1773_v13, 0.0  ;;  %v1275_v17 = vmul.f32 %v1773_v13, %v1773_v13  ;;  %v1702_v18 = vpop.f32.mrb[4].mxu1  ;;  %v1757_v19 = vpop.f32.mrb[6].mxu0 }
 0x11f   : > { %v1240_v20 = vadd.f32 %v1239_v16, %v1238_v8  ;;  %v1774_v21 = vadd.f32 %v1754_v6, %v1702_v18  ;;  %v820_v23 = vpop.f32.mrb[5].mxu1  ;;  %v1154_v25 = vpop.f32.mrb[7].mxu0  ;;  %v1294_v37 = vsel %vm1219_vm2, %v1276_v15, 0.0 }
 0x120   : > { %v1292_v27 = vsel %vm1219_vm2, %v1275_v17, 0.0  ;;  %v1775_v31 = vadd.f32 %v1144_v11, %v820_v23 }
 0x121   : > { %v1293_v33 = vadd.f32 %v1292_v27, %v1291_v14  ;;  %1225 = vst.msk [vmem:[%s2285_s28 + $0x28] sm:$0xff] %vm1219_vm2, %v1774_v21  ;;  %v1242_v36 = vadd.f32 %v1241_v26, %v1240_v20  ;;  %v1278_v38 = vmul.f32 %v1774_v21, %v1774_v21  ;;  %v1245_v49 = vsel %vm1219_vm2, %v1774_v21, 0.0 }
 0x122   : > { %1224 = vst.msk [vmem:[%s2285_s28 + $0x20] sm:$0xff] %vm1219_vm2, %v1775_v31  ;;  %v1243_v39 = vsel %vm1219_vm2, %v1775_v31, 0.0  ;;  %v1277_v40 = vmul.f32 %v1775_v31, %v1775_v31  ;;  %v1705_v42 = vpop.f32.mrb[6].mxu1  ;;  %v1760_v43 = vpop.f32.mrb[8].mxu0 }
 0x123   : > { %v1244_v4 = vadd.f32 %v1243_v39, %v1242_v36  ;;  %v1295_v44 = vadd.f32 %v1294_v37, %v1293_v33  ;;  %v1776_v46 = vadd.f32 %v1757_v19, %v1705_v42  ;;  %v830_v47 = vpop.f32.mrb[7].mxu1  ;;  %v1164_v48 = vpop.f32.mrb[9].mxu0  ;;  %v1298_v54 = vsel %vm1219_vm2, %v1278_v38, 0.0 }
 0x124   : > { %v1296_v50 = vsel %vm1219_vm2, %v1277_v40, 0.0  ;;  %v1777_v5 = vadd.f32 %v1154_v25, %v830_v47 }
 0x125   : > { %v1297_v52 = vadd.f32 %v1296_v50, %v1295_v44  ;;  %1227 = vst.msk [vmem:[%s2285_s28 + $0x38] sm:$0xff] %vm1219_vm2, %v1776_v46  ;;  %v1246_v53 = vadd.f32 %v1245_v49, %v1244_v4  ;;  %v1280_v55 = vmul.f32 %v1776_v46, %v1776_v46  ;;  %v1249_v29 = vsel %vm1219_vm2, %v1776_v46, 0.0 }
 0x126   : > { %1226 = vst.msk [vmem:[%s2285_s28 + $0x30] sm:$0xff] %vm1219_vm2, %v1777_v5  ;;  %v1247_v56 = vsel %vm1219_vm2, %v1777_v5, 0.0  ;;  %v1279_v58 = vmul.f32 %v1777_v5, %v1777_v5  ;;  %v1708_v61 = vpop.f32.mrb[8].mxu1  ;;  %v1763_v62 = vpop.f32.mrb[10].mxu0 }
 0x127   : > { %v1248_v63 = vadd.f32 %v1247_v56, %v1246_v53  ;;  %v1299_v1 = vadd.f32 %v1298_v54, %v1297_v52  ;;  %v1778_v22 = vadd.f32 %v1760_v43, %v1708_v61  ;;  %v840_v24 = vpop.f32.mrb[9].mxu1  ;;  %v1174_v28 = vpop.f32.mrb[11].mxu0  ;;  %v1302_v41 = vsel %vm1219_vm2, %v1280_v55, 0.0 }
 0x128   : > { %v1300_v30 = vsel %vm1219_vm2, %v1279_v58, 0.0  ;;  %v1779_v32 = vadd.f32 %v1164_v48, %v840_v24 }
 0x129   : > { %v1301_v34 = vadd.f32 %v1300_v30, %v1299_v1  ;;  %1229 = vst.msk [vmem:[%s2285_s28 + $0x48] sm:$0xff] %vm1219_vm2, %v1778_v22  ;;  %v1250_v35 = vadd.f32 %v1249_v29, %v1248_v63  ;;  %v1282_v45 = vmul.f32 %v1778_v22, %v1778_v22  ;;  %v1253_v8 = vsel %vm1219_vm2, %v1778_v22, 0.0 }
 0x12a   : > { %1228 = vst.msk [vmem:[%s2285_s28 + $0x40] sm:$0xff] %vm1219_vm2, %v1779_v32  ;;  %v1251_v51 = vsel %vm1219_vm2, %v1779_v32, 0.0  ;;  %v1281_v57 = vmul.f32 %v1779_v32, %v1779_v32  ;;  %v1711_v59 = vpop.f32.mrb[10].mxu1  ;;  %v1766_v60 = vpop.f32.mrb[12].mxu0 }
 0x12b   : > { %v1252_v0 = vadd.f32 %v1251_v51, %v1250_v35  ;;  %v1303_v2 = vadd.f32 %v1302_v41, %v1301_v34  ;;  %v1780_v3 = vadd.f32 %v1763_v62, %v1711_v59  ;;  %v850_v6 = vpop.f32.mrb[11].mxu1  ;;  %v1184_v7 = vpop.f32.mrb[13].mxu0  ;;  %v1306_v13 = vsel %vm1219_vm2, %v1282_v45, 0.0 }
 0x12c   : > { %v1304_v9 = vsel %vm1219_vm2, %v1281_v57, 0.0  ;;  %v1781_v10 = vadd.f32 %v1174_v28, %v850_v6 }
 0x12d   : > { %v1305_v11 = vadd.f32 %v1304_v9, %v1303_v2  ;;  %1231 = vst.msk [vmem:[%s2285_s28 + $0x58] sm:$0xff] %vm1219_vm2, %v1780_v3  ;;  %v1254_v12 = vadd.f32 %v1253_v8, %v1252_v0  ;;  %v1284_v14 = vmul.f32 %v1780_v3, %v1780_v3  ;;  %v1257_v26 = vsel %vm1219_vm2, %v1780_v3, 0.0 }
 0x12e   : > { %1230 = vst.msk [vmem:[%s2285_s28 + $0x50] sm:$0xff] %vm1219_vm2, %v1781_v10  ;;  %v1255_v15 = vsel %vm1219_vm2, %v1781_v10, 0.0  ;;  %v1283_v16 = vmul.f32 %v1781_v10, %v1781_v10  ;;  %v1714_v17 = vpop.f32.mrb[12].mxu1  ;;  %v1769_v18 = vpop.f32.mrb[14].mxu0 }
 0x12f   : > { %v1256_v19 = vadd.f32 %v1255_v15, %v1254_v12  ;;  %v1307_v20 = vadd.f32 %v1306_v13, %v1305_v11  ;;  %v1782_v21 = vadd.f32 %v1766_v60, %v1714_v17  ;;  %v860_v23 = vpop.f32.mrb[13].mxu1  ;;  %v1194_v25 = vpop.f32.mrb[15].mxu0  ;;  %v1310_v37 = vsel %vm1219_vm2, %v1284_v14, 0.0 }
 0x130   : > { %v1308_v27 = vsel %vm1219_vm2, %v1283_v16, 0.0  ;;  %v1783_v31 = vadd.f32 %v1184_v7, %v860_v23 }
 0x131   : > { %v1309_v33 = vadd.f32 %v1308_v27, %v1307_v20  ;;  %1233 = vst.msk [vmem:[%s2285_s28 + $0x68] sm:$0xff] %vm1219_vm2, %v1782_v21  ;;  %v1258_v36 = vadd.f32 %v1257_v26, %v1256_v19  ;;  %v1286_v38 = vmul.f32 %v1782_v21, %v1782_v21  ;;  %v1261_v47 = vsel %vm1219_vm2, %v1782_v21, 0.0 }
 0x132   : > { %1232 = vst.msk [vmem:[%s2285_s28 + $0x60] sm:$0xff] %vm1219_vm2, %v1783_v31  ;;  %v1259_v39 = vsel %vm1219_vm2, %v1783_v31, 0.0  ;;  %v1285_v40 = vmul.f32 %v1783_v31, %v1783_v31  ;;  %v1717_v42 = vpop.f32.mrb[14].mxu1 }
 0x133   : > { %v1260_v43 = vadd.f32 %v1259_v39, %v1258_v36  ;;  %v1311_v4 = vadd.f32 %v1310_v37, %v1309_v33  ;;  %v1784_v44 = vadd.f32 %v1769_v18, %v1717_v42  ;;  %v870_v46 = vpop.f32.mrb[15].mxu1  ;;  %v1314_v52 = vsel %vm1219_vm2, %v1286_v38, 0.0 }
 0x134   : > { %v1312_v48 = vsel %vm1219_vm2, %v1285_v40, 0.0  ;;  %v1785_v49 = vadd.f32 %v1194_v25, %v870_v46 }
 0x135   : > { %v1313_v50 = vadd.f32 %v1312_v48, %v1311_v4  ;;  %1235 = vst.msk [vmem:[%s2285_s28 + $0x78] sm:$0xff] %vm1219_vm2, %v1784_v44  ;;  %v1262_v5 = vadd.f32 %v1261_v47, %v1260_v43  ;;  %v1288_v53 = vmul.f32 %v1784_v44, %v1784_v44  ;;  %v1265_v61 = vsel %vm1219_vm2, %v1784_v44, 0.0 }
 0x136   : > { %1234 = vst.msk [vmem:[%s2285_s28 + $0x70] sm:$0xff] %vm1219_vm2, %v1785_v49  ;;  %v1263_v54 = vsel %vm1219_vm2, %v1785_v49, 0.0  ;;  %v1287_v55 = vmul.f32 %v1785_v49, %v1785_v49 }
 0x137   : > { %v1264_v56 = vadd.f32 %v1263_v54, %v1262_v5  ;;  %v1315_v58 = vadd.f32 %v1314_v52, %v1313_v50  ;;  %v1318_v22 = vsel %vm1219_vm2, %v1288_v53, 0.0 }
 0x138   : > { %v1316_v62 = vsel %vm1219_vm2, %v1287_v55, 0.0 }
 0x139   : > { %v1266_v63 = vadd.f32 %v1265_v61, %v1264_v56  ;;  %v1317_v1 = vadd.f32 %v1316_v62, %v1315_v58 }
 0x13b   : > { %v1267_v24 = vrot.slane %v1266_v63, 4  ;;  %v1319_v28 = vadd.f32 %v1318_v22, %v1317_v1 }
 0x13d   : > { %v1268_v29 = vadd.f32 %v1267_v24, %v1266_v63  ;;  %v1320_v30 = vrot.slane %v1319_v28, 4 }
 0x13f   : > { %v1269_v32 = vrot.slane %v1268_v29, 2  ;;  %v1321_v34 = vadd.f32 %v1320_v30, %v1319_v28 }
 0x141   : > { %v1270_v35 = vadd.f32 %v1269_v32, %v1268_v29  ;;  %v1322_v41 = vrot.slane %v1321_v34, 2 }
 0x143   : > { %v1271_v45 = vrot.slane %v1270_v35, 1  ;;  %v1323_v51 = vadd.f32 %v1322_v41, %v1321_v34 }
 0x145   : > { %v1324_v57 = vrot.slane %v1323_v51, 1  ;;  %v1272_v59 = vadd.f32 %v1271_v45, %v1270_v35 }
 0x147   : > { %v1325_v60 = vadd.f32 %v1324_v57, %v1323_v51 }
 0x149   : > { %v1327_v0 = vsel %vm1326_vm3, %v1272_v59, %v1325_v60 }
 0x14a   : > { %1329 = vst.msk [vmem:[%s378_s8] sm:$0x3] %vm1328_vm4, %v1327_v0 }
 0x14b PF: > { %s17_s25 = sadd.s32 1, %s1897_s25   ;;  %s2380_s21 = smov %s1889_s23 }
 0x14c   : > { %p14_p10 = scmp.ge.s32.totalorder %s17_s25, 6   ;;  %s2381_s22 = smov %s1893_s24 }
 0x14d   : > { %s2382_s23 = smov %s2385_s26  ;;  %s2383_s24 = smov %s2389_s27 }
 0x14e   :  { %16 = sbr.rel (!%p14_p10) target bundleno = 3 (0x3), region = 88 }

// kernel: decoder_block_forward.3
= control target key start
LH: loop header
LB: loop body
LE: loop exit
PB: predicated region body
PF: predicated region fallthrough
CT: control target
= control target key end

     0   :  { %s3179_s15 = smov 0   ;;  %s3181_s16 = smov 0   ;;  %s3932_s0 = inlined_call_operand.vmem [shape: f32[2,18,18,4], index: 0, kind: input, shape index: {}, may-alias: {0,1}]   ;;  %s3933_s1 = inlined_call_operand.vmem [shape: f32[2,18,18,4], index: 1, kind: input, shape index: {}, may-alias: {0,1}]   ;;  %s3934_s2 = inlined_call_operand.vmem [shape: f32[9,4,8], index: 2, kind: input, shape index: {}]   ;;  %s3935_s3 = inlined_call_operand.vmem [shape: f32[2,16,16,8], index: 3, kind: output, shape index: {0}]   ;;  %s3936_s4 = inlined_call_operand.vmem [shape: f32[2,2,2,8], index: 4, kind: output, shape index: {1}]  }
   0x1   :  { %s3183_s17 = smov 0   ;;  %s3185_s18 = smov 0  }
   0x2   :  { %s3187_s19 = smov 0  }
   0x3 LB: > { %s24_s20 = sadd.s32 1, %s3144_s17  ;;  %s27_s21 = sadd.s32 1, %s3148_s18  ;;  %s3152_s19 = sphi %s3187_s19, %s15_s19   ;;  %s3148_s18 = sphi %s3185_s18, %s3941_s18   ;;  %s3144_s17 = sphi %s3183_s17, %s3940_s17   ;;  %s3140_s16 = sphi %s3181_s16, %s3939_s16   ;;  %s3136_s15 = sphi %s3179_s15, %s3938_s15  }
   0x4   : > { %p25_p0 = scmp.ge.s32.totalorder %s24_s20, 2  ;;  %p2370_p1 = scmp.ge.s32.totalorder %s3152_s19, 1 }
   0x5   : > { %p225_p2 = scmp.lt.s32.totalorder %s3152_s19, 5 }
   0x6   : > { %s3943_s20 = smov (%p25_p0, %s24_s20), 0  ;;  %s3945_s21 = smov (!%p25_p0, %s27_s21), %s3148_s18 }
   0x7   : > { %p226_p3 = pnand %p2370_p1, %p225_p2  ;;  %p29_p4 = scmp.ge.s32.totalorder %s3945_s21, 2 }
   0x8   : > { %v2382_v0 = vld [vmem:[%s3934_s2 + $0x4] sm:$0xf] (!%p226_p3)  ;;  %vm472_vm0 = vcmask (!%p226_p3), 1043456   ;;  %v3217_v1 = vld [vmem:[%s3934_s2 + $0x10] sm:$0xf] (!%p226_p3)  ;;  %s3220_s26 = sshll.u32 (!%p226_p3), %s3136_s15, 3 }
   0x9   : > { %s3947_s21 = smov (%p29_p4, %s3945_s21), 0  ;;  %229 = sbr.rel (%p226_p3) target bundleno = 406 (0x196), region = 32 }
   0xa   : > { %2707 = vmatprep.subr.msk.mxu1 (!%p226_p3), %vm472_vm0, %v2382_v0  ;;  %2811 = vmatprep.subr.msk.mxu0 (!%p226_p3), %vm472_vm0, %v3217_v1  ;;  %p292_p5 = scmp.lt.s32.totalorder (!%p226_p3), %s3140_s16, 1  ;;  %p294_p6 = scmp.lt.s32.totalorder (!%p226_p3), %s3220_s26, 17  ;;  %v371_v2 = vld [vmem:[%s3934_s2] sm:$0xf] (!%p226_p3)  ;;  %v2471_v3 = vld [vmem:[%s3934_s2 + $0x14] sm:$0xf] (!%p226_p3) }
   0xb   : > { %2708 = vmatpush3.msk.msra.mxu1 (!%p226_p3), %vm472_vm0, %v2382_v0  ;;  %2812 = vmatpush3.msk.msra.mxu0 (!%p226_p3), %vm472_vm0, %v3217_v1  ;;  %s2553_s13 = sadd.s32 (!%p226_p3), 8, %s3220_s26  ;;  %vm396_vm1 = vcmask (!%p226_p3), 1046528   ;;  %vm439_vm2 = vcmask (!%p226_p3), 31744   ;;  %v3318_v33 = vld [vmem:[%s3934_s2 + $0x18] sm:$0xf] (!%p226_p3)  ;;  %vm801_vm3 = vcmask (!%p226_p3), 1045504  }
   0xc   : > { %2733 = vmatprep.subr.msk.mxu1 (!%p226_p3), %vm472_vm0, %v371_v2  ;;  %2837 = vmatprep.subr.msk.mxu0 (!%p226_p3), %vm472_vm0, %v2471_v3  ;;  %p3277_p7 = scmp.lt.s32.totalorder (!%p226_p3), %s2553_s13, 17  ;;  %v3328_v35 = vld [vmem:[%s3934_s2 + $0x8] sm:$0xf] (!%p226_p3)  ;;  %p325_p8 = scmp.lt.s32.totalorder (!%p226_p3), %s3220_s26, 15  ;;  %vm2086_vm4 = vcmask (!%p226_p3), 64512   ;;  %vm2193_vm5 = vcmask (!%p226_p3), 1040384  }
   0xd   : > { %p335_p9 = scmp.lt.s32.totalorder (!%p226_p3), %s3136_s15, 1  ;;  %vm2195_vm6 = vcmask (!%p226_p3), 58368  }
  0x10   : > { %s3949_s16 = smov (!%p292_p5, %s3140_s16), 1  ;;  %s3951_s13 = smov (!%p3277_p7, %s2553_s13), 17 }
  0x11   : > { %s295_s5 = scalar_select %p294_p6, %s3220_s26, 17 }
  0x12   : > { %s3072_s6 = smul.u32 54, %s3949_s16  ;;  %s3953_s26 = smov (!%p325_p8, %s3220_s26), 15 }
  0x13   : > { %s3071_s7 = smul.u32 3, %s295_s5  ;;  %s2378_s14 = sshll.u32 %s3949_s16, 5 }
  0x14   : > { %s3073_s27 = smul.u32 3, %s3951_s13  ;;  %s2377_s13 = sshll.u32 %s3953_s26, 1 }
  0x15   : > { %s298_s8 = sadd.s32 %s3072_s6, %s3071_s7  ;;  %s329_s22 = sadd.s32 %s2378_s14, %s2377_s13 }
  0x16   : > { %s2372_s9 = sshll.u32 %s298_s8, 3  ;;  %s3390_s28 = sadd.s32 %s3073_s27, %s3072_s6 }
  0x17   : > { %s3246_s12 = scalar_lea.vmem %s3932_s0, %s2372_s9  ;;  %s2375_s29 = sshll.u32 %s3390_s28, 3 }
  0x18   : > { %v3250_v4 = vld [vmem:[%s3246_s12] sm:$0xff]  ;;  %v3253_v5 = vld [vmem:[%s3246_s12 + $0x8] sm:$0xff]  ;;  %v3256_v6 = vld [vmem:[%s3246_s12 + $0x18] sm:$0xff]  ;;  %s3447_s6 = scalar_lea.vmem %s3933_s1, %s2375_s29  ;;  %s2379_s23 = sshll.u32 %s329_s22, 3 }
  0x19   : > { %v397_v7 = vrot.slane %v3250_v4, 1  ;;  %v398_v8 = vrot.slane %v3253_v5, 1  ;;  %v3261_v9 = vld [vmem:[%s3246_s12 + $0x20] sm:$0xff]  ;;  %v402_v10 = vrot.slane %v3256_v6, 1  ;;  %v3265_v11 = vld [vmem:[%s3246_s12 + $0x10] sm:$0x3]  ;;  %s3845_s27 = scalar_lea.vmem %s3935_s3, %s2379_s23 }
  0x1a   : > { %v403_v12 = vrot.slane %v3261_v9, 1  ;;  %v400_v13 = vrot.slane %v3265_v11, 1  ;;  %v3270_v14 = vld [vmem:[%s3246_s12 + $0x28] sm:$0x3]  ;;  %v3273_v15 = vld [vmem:[%s3246_s12 + $0x30] sm:$0xff]  ;;  %v3284_v18 = vld [vmem:[%s3246_s12 + $0x38] sm:$0xff] }
  0x1b   : > { %v399_v16 = vsel %vm396_vm1, %v397_v7, %v398_v8  ;;  %v405_v17 = vrot.slane %v3270_v14, 1  ;;  %v407_v19 = vrot.slane %v3273_v15, 1  ;;  %v3288_v20 = vld [vmem:[%s3246_s12 + $0x40] sm:$0x3]  ;;  %v408_v23 = vrot.slane %v3284_v18, 1  ;;  %v3296_v25 = vld [vmem:[%s3246_s12 + $0x48] sm:$0xff] }
  0x1c   : > { %2709 = vmatprep.mubr.msk.f32.mxu1 %vm439_vm2, %v399_v16  ;;  %v404_v21 = vsel %vm396_vm1, %v402_v10, %v403_v12  ;;  %v401_v22 = vsel %vm396_vm1, %v398_v8, %v400_v13  ;;  %v410_v24 = vrot.slane %v3288_v20, 1  ;;  %v3299_v26 = vld [vmem:[%s3246_s12 + $0x50] sm:$0xff]  ;;  %v3302_v27 = vld [vmem:[%s3246_s12 + $0x58] sm:$0x3]  ;;  %v412_v29 = vrot.slane %v3296_v25, 1  ;;  %v3310_v31 = vld [vmem:[%s3246_s12 + $0x60] sm:$0xff] }
  0x1d   : > { %2813 = vmatprep.mubr.msk.f32.mxu0 %vm439_vm2, %v404_v21  ;;  %2710 = vmatmul.mubr.msk.f32.vlgmr.msra.gmra.mrb[0].mxu1 %vm439_vm2, %v401_v22  ;;  %v406_v28 = vsel %vm396_vm1, %v403_v12, %v405_v17  ;;  %v413_v30 = vrot.slane %v3299_v26, 1  ;;  %v3313_v32 = vld [vmem:[%s3246_s12 + $0x68] sm:$0xff]  ;;  %v3323_v34 = vsel %vm396_vm1, %v407_v19, %v408_v23  ;;  %v415_v37 = vrot.slane %v3302_v27, 1  ;;  %v3350_v41 = vld [vmem:[%s3246_s12 + $0x70] sm:$0x3]  ;;  %v3374_v47 = vld [vmem:[%s3246_s12 + $0x78] sm:$0xff] }
  0x1e   : > { %2734 = vmatpush3.msk.msra.mxu1 %vm472_vm0, %v371_v2  ;;  %2814 = vmatmul.mubr.msk.f32.vlgmr.msra.gmra.mrb[0].mxu0 %vm439_vm2, %v406_v28  ;;  %v3339_v36 = vsel %vm396_vm1, %v408_v23, %v410_v24  ;;  %v417_v39 = vrot.slane %v3310_v31, 1  ;;  %v418_v40 = vrot.slane %v3313_v32, 1  ;;  %v420_v43 = vrot.slane %v3350_v41, 1  ;;  %v3377_v48 = vld [vmem:[%s3246_s12 + $0x80] sm:$0xff]  ;;  %v3386_v49 = vld [vmem:[%s3246_s12 + $0x88] sm:$0x3] }
  0x1f   : > { %2838 = vmatpush3.msk.msra.mxu0 %vm472_vm0, %v2471_v3  ;;  %2712 = vmatprep.mubr.msk.f32.mxu1 %vm439_vm2, %v404_v21  ;;  %v3345_v38 = vsel %vm396_vm1, %v412_v29, %v413_v30  ;;  %v3365_v42 = vsel %vm396_vm1, %v413_v30, %v415_v37  ;;  %v807_v45 = vrot.slane %v3256_v6, 2  ;;  %v808_v46 = vrot.slane %v3261_v9, 2  ;;  %v3401_v54 = vld [vmem:[%s3246_s12 + $0x90] sm:$0xff]  ;;  %v3404_v55 = vld [vmem:[%s3246_s12 + $0x98] sm:$0xff]  ;;  %v3431_v2 = vld [vmem:[%s3246_s12 + $0xa0] sm:$0x3] }
  0x20   : > { %2816 = vmatprep.mubr.msk.f32.mxu0 %vm439_vm2, %v3323_v34  ;;  %2863 = vmatprep.subr.msk.mxu0 %vm472_vm0, %v3318_v33  ;;  %v3369_v44 = vsel %vm396_vm1, %v417_v39, %v418_v40  ;;  %v810_v50 = vrot.slane %v3270_v14, 2  ;;  %v3396_v51 = vsel %vm396_vm1, %v418_v40, %v420_v43  ;;  %v422_v52 = vrot.slane %v3374_v47, 1  ;;  %v3439_v10 = vld [vmem:[%s3246_s12 + $0xa8] sm:$0xff]  ;;  %v3442_v12 = vld [vmem:[%s3246_s12 + $0xb0] sm:$0xff]  ;;  %v3457_v14 = vld [vmem:[%s3934_s2 + $0x1c] sm:$0xf] }
  0x21   : > { %2713 = vmatmul.mubr.msk.f32.gmra.mrb[2].mxu1 %vm439_vm2, %v406_v28  ;;  %2759 = vmatprep.subr.msk.mxu1 %vm472_vm0, %v3328_v35  ;;  %v423_v53 = vrot.slane %v3377_v48, 1  ;;  %v3407_v56 = vsel %vm801_vm3, %v807_v45, %v808_v46  ;;  %v812_v57 = vrot.slane %v3273_v15, 2  ;;  %v813_v58 = vrot.slane %v3284_v18, 2  ;;  %v3460_v16 = vld [vmem:[%s3447_s6 + $0x20] sm:$0xff]  ;;  %v370_v17 = vld [vmem:[%s3447_s6 + $0x28] sm:$0x3] }
  0x22   : > { %2817 = vmatmul.mubr.msk.f32.gmra.mrb[2].mxu0 %vm439_vm2, %v3339_v36  ;;  %2715 = vmatprep.mubr.msk.f32.mxu1 %vm439_vm2, %v3323_v34  ;;  %v425_v59 = vrot.slane %v3386_v49, 1  ;;  %v815_v60 = vrot.slane %v3288_v20, 2  ;;  %v427_v61 = vrot.slane %v3401_v54, 1  ;;  %v428_v62 = vrot.slane %v3404_v55, 1  ;;  %v364_v29 = vld [vmem:[%s3246_s12 + $0xb8] sm:$0x3] }
  0x23   : > { %2819 = vmatprep.mubr.msk.f32.mxu0 %vm439_vm2, %v3345_v38  ;;  %v3425_v63 = vsel %vm801_vm3, %v808_v46, %v810_v50  ;;  %v3428_v0 = vsel %vm396_vm1, %v422_v52, %v423_v53  ;;  %v3434_v3 = vsel %vm801_vm3, %v812_v57, %v813_v58  ;;  %v817_v7 = vrot.slane %v3296_v25, 2  ;;  %s3955_s15 = smov (!%p335_p9, %s3136_s15), 1  ;;  %s2380_s26 = sshll.u32 %s3949_s16, 1 }
  0x24   : > { %v818_v8 = vrot.slane %v3299_v26, 2  ;;  %v3452_v13 = vsel %vm396_vm1, %v423_v53, %v425_v59  ;;  %v3468_v19 = vsel %vm801_vm3, %v813_v58, %v815_v60  ;;  %v3471_v20 = vsel %vm396_vm1, %v427_v61, %v428_v62  ;;  %s338_s28 = sadd.s32 %s2380_s26, %s3955_s15 }
  0x25   : > { %2716 = vmatmul.mubr.msk.f32.gmra.mrb[4].mxu1 %vm439_vm2, %v3339_v36  ;;  %v430_v21 = vrot.slane %v3431_v2, 1  ;;  %v1737_v22 = vrot.slane %v3460_v16, 1  ;;  %v820_v23 = vrot.slane %v3302_v27, 2  ;;  %v432_v24 = vrot.slane %v3439_v10, 1  ;;  %s2381_s29 = sshll.u32 %s338_s28, 1 }
  0x26   : > { %2820 = vmatmul.mubr.msk.f32.gmra.mrb[4].mxu0 %vm439_vm2, %v3365_v42  ;;  %2718 = vmatprep.mubr.msk.f32.mxu1 %vm439_vm2, %v3345_v38  ;;  %v433_v28 = vrot.slane %v3442_v12, 1  ;;  %v1912_v30 = vrot.slane %v3460_v16, 2  ;;  %v3485_v37 = vsel %vm801_vm3, %v817_v7, %v818_v8  ;;  %v822_v39 = vrot.slane %v3310_v31, 2 }
  0x27   : > { %2822 = vmatprep.mubr.msk.f32.mxu0 %vm439_vm2, %v3369_v44  ;;  %v823_v40 = vrot.slane %v3313_v32, 2  ;;  %v1914_v27 = vrot.slane %v370_v17, 2  ;;  %v3498_v43 = vsel %vm396_vm1, %v428_v62, %v430_v21  ;;  %v435_v45 = vrot.slane %v364_v29, 1 }
  0x28   : > { %v3508_v50 = vsel %vm801_vm3, %v818_v8, %v820_v23  ;;  %v3511_v52 = vsel %vm396_vm1, %v432_v24, %v433_v28  ;;  %v825_v53 = vrot.slane %v3350_v41, 2  ;;  %v827_v59 = vrot.slane %v3374_v47, 2 }
  0x29   : > { %2719 = vmatmul.mubr.msk.f32.gmra.mrb[6].mxu1 %vm439_vm2, %v3365_v42  ;;  %v3517_v57 = vsel %vm801_vm3, %v1912_v30, %v1914_v27  ;;  %v3520_v58 = vsel %vm801_vm3, %v822_v39, %v823_v40  ;;  %v828_v60 = vrot.slane %v3377_v48, 2  ;;  %v3531_v41 = vsel %vm396_vm1, %v433_v28, %v435_v45  ;;  %v3564_v39 = vld [vmem:[%s3447_s6] sm:$0xff] }
  0x2a   : > { %2823 = vmatmul.mubr.msk.f32.gmra.mrb[6].mxu0 %vm439_vm2, %v3396_v51  ;;  %2721 = vmatprep.mubr.msk.f32.mxu1 %vm439_vm2, %v3369_v44  ;;  %v3536_v61 = vsel %vm801_vm3, %v823_v40, %v825_v53  ;;  %v830_v62 = vrot.slane %v3386_v49, 2  ;;  %v832_v8 = vrot.slane %v3401_v54, 2  ;;  %v835_v21 = vrot.slane %v3431_v2, 2  ;;  %v3567_v40 = vld [vmem:[%s3447_s6 + $0x8] sm:$0xff] }
  0x2b   : > { %2839 = vmatprep.mubr.msk.f32.mxu0 %vm439_vm2, %v3407_v56  ;;  %v3540_v7 = vsel %vm801_vm3, %v827_v59, %v828_v60  ;;  %v837_v24 = vrot.slane %v3439_v10, 2  ;;  %v838_v28 = vrot.slane %v3442_v12, 2  ;;  %v840_v27 = vrot.slane %v364_v29, 2  ;;  %v3589_v59 = vld [vmem:[%s3447_s6 + $0x10] sm:$0x3] }
  0x2c   : > { %v3553_v49 = vsel %vm801_vm3, %v828_v60, %v830_v62  ;;  %v1388_v53 = vrot.slane %v3564_v39, 2  ;;  %v1391_v60 = vrot.slane %v3589_v59, 2 }
  0x2d   : > { %2722 = vmatmul.mubr.msk.f32.gmra.mrb[8].mxu1 %vm439_vm2, %v3396_v51  ;;  %v3584_v45 = vsel %vm801_vm3, %v837_v24, %v838_v28  ;;  %v3601_v29 = vsel %vm801_vm3, %v838_v28, %v840_v27  ;;  %v805_v24 = vrot.slane %v3265_v11, 2  ;;  %v1213_v11 = vrot.slane %v3564_v39, 1 }
  0x2e   : > { %2840 = vmatmul.mubr.msk.f32.vlgmr.msra.gmra.mrb[0].mxu0 %vm439_vm2, %v3425_v63  ;;  %2724 = vmatprep.mubr.msk.f32.mxu1 %vm439_vm2, %v3428_v0 }
  0x2f   : > { %2864 = vmatpush3.msk.msra.mxu0 %vm472_vm0, %v3318_v33  ;;  %2842 = vmatprep.mubr.msk.f32.mxu0 %vm439_vm2, %v3434_v3  ;;  %v1739_v33 = vrot.slane %v370_v17, 1  ;;  %v833_v17 = vrot.slane %v3404_v55, 2 }
  0x30   : > { %2889 = vmatprep.subr.msk.mxu0 %vm472_vm0, %v3457_v14 }
  0x31   : > { %2725 = vmatmul.mubr.msk.f32.gmra.mrb[10].mxu1 %vm439_vm2, %v3452_v13  ;;  %v3503_v46 = vsel %vm396_vm1, %v1737_v22, %v1739_v33  ;;  %v3557_v23 = vsel %vm801_vm3, %v832_v8, %v833_v17  ;;  %v2435_v33 = vld [vmem:[%s3934_s2 + $0xc] sm:$0xf]  ;;  %v3581_v2 = vsel %vm801_vm3, %v833_v17, %v835_v21  ;;  %v2525_v17 = vld [vmem:[%s3934_s2 + $0x20] sm:$0xf]  ;;  %v802_v21 = vrot.slane %v3250_v4, 2 }
  0x32   : > { %2843 = vmatmul.mubr.msk.f32.gmra.mrb[2].mxu0 %vm439_vm2, %v3468_v19  ;;  %2727 = vmatprep.mubr.msk.f32.mxu1 %vm439_vm2, %v3471_v20 }
  0x33   : > { %2845 = vmatprep.mubr.msk.f32.mxu0 %vm439_vm2, %v3485_v37 }
  0x35   : > { %2728 = vmatmul.mubr.msk.f32.gmra.mrb[12].mxu1 %vm439_vm2, %v3498_v43 }
  0x36   : > { %2846 = vmatmul.mubr.msk.f32.gmra.mrb[4].mxu0 %vm439_vm2, %v3508_v50  ;;  %2730 = vmatprep.mubr.msk.f32.mxu1 %vm439_vm2, %v3511_v52 }
  0x37   : > { %2848 = vmatprep.mubr.msk.f32.mxu0 %vm439_vm2, %v3520_v58 }
  0x39   : > { %2731 = vmatmul.mubr.msk.f32.gmra.mrb[14].mxu1 %vm439_vm2, %v3531_v41 }
  0x3a   : > { %2849 = vmatmul.mubr.msk.f32.gmra.mrb[6].mxu0 %vm439_vm2, %v3536_v61  ;;  %2735 = vmatprep.mubr.msk.f32.mxu1 %vm439_vm2, %v3250_v4 }
  0x3b   : > { %2851 = vmatprep.mubr.msk.f32.mxu0 %vm439_vm2, %v3540_v7 }
  0x3d   : > { %2736 = vmatmul.mubr.msk.f32.vlgmr.msra.gmra.mrb[0].mxu1 %vm439_vm2, %v3253_v5 }
  0x3e   : > { %2760 = vmatpush3.msk.msra.mxu1 %vm472_vm0, %v3328_v35  ;;  %2852 = vmatmul.mubr.msk.f32.gmra.mrb[8].mxu0 %vm439_vm2, %v3553_v49  ;;  %v1389_v35 = vrot.slane %v3567_v40, 2 }
  0x3f   : > { %2738 = vmatprep.mubr.msk.f32.mxu1 %vm439_vm2, %v3256_v6  ;;  %2854 = vmatprep.mubr.msk.f32.mxu0 %vm439_vm2, %v3557_v23 }
  0x40   : > { %2785 = vmatprep.subr.msk.mxu1 %vm472_vm0, %v2435_v33  ;;  %v3605_v62 = vsel %vm801_vm3, %v1388_v53, %v1389_v35  ;;  %v3616_v8 = vsel %vm801_vm3, %v1389_v35, %v1391_v60 }
  0x41   : > { %2739 = vmatmul.mubr.msk.f32.gmra.mrb[2].mxu1 %vm439_vm2, %v3261_v9 }
  0x42   : > { %2855 = vmatmul.mubr.msk.f32.gmra.mrb[10].mxu0 %vm439_vm2, %v3581_v2  ;;  %2741 = vmatprep.mubr.msk.f32.mxu1 %vm439_vm2, %v3273_v15 }
  0x43   : > { %2857 = vmatprep.mubr.msk.f32.mxu0 %vm439_vm2, %v3584_v45 }
  0x45   : > { %2742 = vmatmul.mubr.msk.f32.gmra.mrb[4].mxu1 %vm439_vm2, %v3284_v18 }
  0x46   : > { %2858 = vmatmul.mubr.msk.f32.gmra.mrb[12].mxu0 %vm439_vm2, %v3601_v29  ;;  %2744 = vmatprep.mubr.msk.f32.mxu1 %vm439_vm2, %v3296_v25 }
  0x47   : > { %2860 = vmatprep.mubr.msk.f32.mxu0 %vm439_vm2, %v3605_v62 }
  0x49   : > { %2745 = vmatmul.mubr.msk.f32.gmra.mrb[6].mxu1 %vm439_vm2, %v3299_v26 }
  0x4a   : > { %2861 = vmatmul.mubr.msk.f32.gmra.mrb[14].mxu0 %vm439_vm2, %v3616_v8  ;;  %2747 = vmatprep.mubr.msk.f32.mxu1 %vm439_vm2, %v3310_v31 }
  0x4b   : > { %2865 = vmatprep.mubr.msk.f32.mxu0 %vm439_vm2, %v3273_v15 }
  0x4d   : > { %2748 = vmatmul.mubr.msk.f32.gmra.mrb[8].mxu1 %vm439_vm2, %v3313_v32 }
  0x4e   : > { %2866 = vmatmul.mubr.msk.f32.vlgmr.msra.gmra.mrb[0].mxu0 %vm439_vm2, %v3284_v18  ;;  %2750 = vmatprep.mubr.msk.f32.mxu1 %vm439_vm2, %v3374_v47 }
  0x4f   : > { %2890 = vmatpush3.msk.msra.mxu0 %vm472_vm0, %v3457_v14  ;;  %2868 = vmatprep.mubr.msk.f32.mxu0 %vm439_vm2, %v3296_v25  ;;  %v803_v14 = vrot.slane %v3253_v5, 2  ;;  %v3687_v5 = vld [vmem:[%s3447_s6 + $0x18] sm:$0xff]  ;;  %s340_s6 = scalar_lea.vmem %s3936_s4, %s2381_s29 }
  0x50   : > { %2915 = vmatprep.subr.msk.mxu0 %vm472_vm0, %v2525_v17 }
  0x51   : > { %2751 = vmatmul.mubr.msk.f32.gmra.mrb[10].mxu1 %vm439_vm2, %v3377_v48  ;;  %v804_v28 = vsel %vm801_vm3, %v802_v21, %v803_v14  ;;  %v806_v4 = vsel %vm801_vm3, %v803_v14, %v805_v24 }
  0x52   : > { %2869 = vmatmul.mubr.msk.f32.gmra.mrb[2].mxu0 %vm439_vm2, %v3299_v26  ;;  %2753 = vmatprep.mubr.msk.f32.mxu1 %vm439_vm2, %v3401_v54 }
  0x53   : > { %2871 = vmatprep.mubr.msk.f32.mxu0 %vm439_vm2, %v3310_v31 }
  0x55   : > { %2754 = vmatmul.mubr.msk.f32.gmra.mrb[12].mxu1 %vm439_vm2, %v3404_v55 }
  0x56   : > { %2872 = vmatmul.mubr.msk.f32.gmra.mrb[4].mxu0 %vm439_vm2, %v3313_v32  ;;  %2756 = vmatprep.mubr.msk.f32.mxu1 %vm439_vm2, %v3439_v10 }
  0x57   : > { %2874 = vmatprep.mubr.msk.f32.mxu0 %vm439_vm2, %v3374_v47 }
  0x59   : > { %2757 = vmatmul.mubr.msk.f32.gmra.mrb[14].mxu1 %vm439_vm2, %v3442_v12 }
  0x5a   : > { %2875 = vmatmul.mubr.msk.f32.gmra.mrb[6].mxu0 %vm439_vm2, %v3377_v48  ;;  %2761 = vmatprep.mubr.msk.f32.mxu1 %vm439_vm2, %v804_v28 }
  0x5b   : > { %2877 = vmatprep.mubr.msk.f32.mxu0 %vm439_vm2, %v3401_v54 }
  0x5d   : > { %2762 = vmatmul.mubr.msk.f32.vlgmr.msra.gmra.mrb[0].mxu1 %vm439_vm2, %v806_v4 }
  0x5e   : > { %2786 = vmatpush3.msk.msra.mxu1 %vm472_vm0, %v2435_v33  ;;  %2878 = vmatmul.mubr.msk.f32.gmra.mrb[8].mxu0 %vm439_vm2, %v3404_v55 }
  0x5f   : > { %2764 = vmatprep.mubr.msk.f32.mxu1 %vm439_vm2, %v3407_v56  ;;  %2880 = vmatprep.mubr.msk.f32.mxu0 %vm439_vm2, %v3439_v10 }
  0x60   : > { %2941 = vmatprep.subr.msk.mxu1 %vm472_vm0, %v3217_v1 }
  0x61   : > { %2765 = vmatmul.mubr.msk.f32.gmra.mrb[2].mxu1 %vm439_vm2, %v3425_v63 }
  0x62   : > { %2881 = vmatmul.mubr.msk.f32.gmra.mrb[10].mxu0 %vm439_vm2, %v3442_v12  ;;  %2767 = vmatprep.mubr.msk.f32.mxu1 %vm439_vm2, %v3434_v3 }
  0x63   : > { %2883 = vmatprep.mubr.msk.f32.mxu0 %vm439_vm2, %v3564_v39 }
  0x65   : > { %2768 = vmatmul.mubr.msk.f32.gmra.mrb[4].mxu1 %vm439_vm2, %v3468_v19 }
  0x66   : > { %2884 = vmatmul.mubr.msk.f32.gmra.mrb[12].mxu0 %vm439_vm2, %v3567_v40  ;;  %2770 = vmatprep.mubr.msk.f32.mxu1 %vm439_vm2, %v3485_v37 }
  0x67   : > { %2886 = vmatprep.mubr.msk.f32.mxu0 %vm439_vm2, %v3687_v5 }
  0x69   : > { %2771 = vmatmul.mubr.msk.f32.gmra.mrb[6].mxu1 %vm439_vm2, %v3508_v50 }
  0x6a   : > { %2887 = vmatmul.mubr.msk.f32.gmra.mrb[14].mxu0 %vm439_vm2, %v3460_v16  ;;  %2773 = vmatprep.mubr.msk.f32.mxu1 %vm439_vm2, %v3520_v58 }
  0x6b   : > { %2891 = vmatprep.mubr.msk.f32.mxu0 %vm439_vm2, %v3323_v34  ;;  %v1214_v34 = vrot.slane %v3567_v40, 1 }
  0x6d   : > { %2774 = vmatmul.mubr.msk.f32.gmra.mrb[8].mxu1 %vm439_vm2, %v3536_v61 }
  0x6e   : > { %2892 = vmatmul.mubr.msk.f32.vlgmr.msra.gmra.mrb[0].mxu0 %vm439_vm2, %v3339_v36  ;;  %2776 = vmatprep.mubr.msk.f32.mxu1 %vm439_vm2, %v3540_v7  ;;  %v1736_v36 = vrot.slane %v3687_v5, 1 }
  0x6f   : > { %2916 = vmatpush3.msk.msra.mxu0 %vm472_vm0, %v2525_v17  ;;  %2894 = vmatprep.mubr.msk.f32.mxu0 %vm439_vm2, %v3345_v38  ;;  %v1215_v38 = vsel %vm396_vm1, %v1213_v11, %v1214_v34 }
  0x71   : > { %2777 = vmatmul.mubr.msk.f32.gmra.mrb[10].mxu1 %vm439_vm2, %v3553_v49 }
  0x72   : > { %2895 = vmatmul.mubr.msk.f32.gmra.mrb[2].mxu0 %vm439_vm2, %v3365_v42  ;;  %2779 = vmatprep.mubr.msk.f32.mxu1 %vm439_vm2, %v3557_v23 }
  0x73   : > { %2897 = vmatprep.mubr.msk.f32.mxu0 %vm439_vm2, %v3369_v44 }
  0x75   : > { %2780 = vmatmul.mubr.msk.f32.gmra.mrb[12].mxu1 %vm439_vm2, %v3581_v2 }
  0x76   : > { %2898 = vmatmul.mubr.msk.f32.gmra.mrb[4].mxu0 %vm439_vm2, %v3396_v51  ;;  %2782 = vmatprep.mubr.msk.f32.mxu1 %vm439_vm2, %v3584_v45 }
  0x77   : > { %2900 = vmatprep.mubr.msk.f32.mxu0 %vm439_vm2, %v3428_v0 }
  0x79   : > { %2783 = vmatmul.mubr.msk.f32.gmra.mrb[14].mxu1 %vm439_vm2, %v3601_v29 }
  0x7a   : > { %2901 = vmatmul.mubr.msk.f32.gmra.mrb[6].mxu0 %vm439_vm2, %v3452_v13  ;;  %2787 = vmatprep.mubr.msk.f32.mxu1 %vm439_vm2, %v3256_v6  ;;  %v1216_v6 = vrot.slane %v3589_v59, 1 }
  0x7b   : > { %2903 = vmatprep.mubr.msk.f32.mxu0 %vm439_vm2, %v3471_v20 }
  0x7d   : > { %2788 = vmatmul.mubr.msk.f32.vlgmr.msra.gmra.mrb[0].mxu1 %vm439_vm2, %v3261_v9  ;;  %v1738_v9 = vsel %vm396_vm1, %v1736_v36, %v1737_v22 }
  0x7e   : > { %2942 = vmatpush3.msk.msra.mxu1 %vm472_vm0, %v3217_v1  ;;  %2904 = vmatmul.mubr.msk.f32.gmra.mrb[8].mxu0 %vm439_vm2, %v3498_v43  ;;  %v1217_v1 = vsel %vm396_vm1, %v1214_v34, %v1216_v6 }
  0x7f   : > { %2790 = vmatprep.mubr.msk.f32.mxu1 %vm439_vm2, %v3273_v15  ;;  %2906 = vmatprep.mubr.msk.f32.mxu0 %vm439_vm2, %v3511_v52  ;;  %v1911_v15 = vrot.slane %v3687_v5, 2 }
  0x81   : > { %2791 = vmatmul.mubr.msk.f32.gmra.mrb[2].mxu1 %vm439_vm2, %v3284_v18  ;;  %v1913_v18 = vsel %vm801_vm3, %v1911_v15, %v1912_v30 }
  0x82   : > { %2907 = vmatmul.mubr.msk.f32.gmra.mrb[10].mxu0 %vm439_vm2, %v3531_v41  ;;  %2793 = vmatprep.mubr.msk.f32.mxu1 %vm439_vm2, %v3296_v25 }
  0x83   : > { %2909 = vmatprep.mubr.msk.f32.mxu0 %vm439_vm2, %v1215_v38 }
  0x85   : > { %2794 = vmatmul.mubr.msk.f32.gmra.mrb[4].mxu1 %vm439_vm2, %v3299_v26 }
  0x86   : > { %2910 = vmatmul.mubr.msk.f32.gmra.mrb[12].mxu0 %vm439_vm2, %v1217_v1  ;;  %2796 = vmatprep.mubr.msk.f32.mxu1 %vm439_vm2, %v3310_v31 }
  0x87   : > { %2912 = vmatprep.mubr.msk.f32.mxu0 %vm439_vm2, %v1738_v9 }
  0x89   : > { %2797 = vmatmul.mubr.msk.f32.gmra.mrb[6].mxu1 %vm439_vm2, %v3313_v32 }
  0x8a   : > { %2913 = vmatmul.mubr.msk.f32.gmra.mrb[14].mxu0 %vm439_vm2, %v3503_v46  ;;  %2799 = vmatprep.mubr.msk.f32.mxu1 %vm439_vm2, %v3374_v47 }
  0x8b   : > { %2917 = vmatprep.mubr.msk.f32.mxu0 %vm439_vm2, %v3434_v3 }
  0x8d   : > { %2800 = vmatmul.mubr.msk.f32.gmra.mrb[8].mxu1 %vm439_vm2, %v3377_v48 }
  0x8e   : > { %2918 = vmatmul.mubr.msk.f32.vlgmr.msra.gmra.mrb[0].mxu0 %vm439_vm2, %v3468_v19  ;;  %2802 = vmatprep.mubr.msk.f32.mxu1 %vm439_vm2, %v3401_v54 }
  0x8f   : > { %2920 = vmatprep.mubr.msk.f32.mxu0 %vm439_vm2, %v3485_v37 }
  0x91   : > { %2803 = vmatmul.mubr.msk.f32.gmra.mrb[10].mxu1 %vm439_vm2, %v3404_v55 }
  0x92   : > { %2921 = vmatmul.mubr.msk.f32.gmra.mrb[2].mxu0 %vm439_vm2, %v3508_v50  ;;  %2805 = vmatprep.mubr.msk.f32.mxu1 %vm439_vm2, %v3439_v10 }
  0x93   : > { %2923 = vmatprep.mubr.msk.f32.mxu0 %vm439_vm2, %v3520_v58 }
  0x95   : > { %2806 = vmatmul.mubr.msk.f32.gmra.mrb[12].mxu1 %vm439_vm2, %v3442_v12 }
  0x96   : > { %2924 = vmatmul.mubr.msk.f32.gmra.mrb[4].mxu0 %vm439_vm2, %v3536_v61  ;;  %2808 = vmatprep.mubr.msk.f32.mxu1 %vm439_vm2, %v3564_v39 }
  0x97   : > { %2926 = vmatprep.mubr.msk.f32.mxu0 %vm439_vm2, %v3540_v7 }
  0x99   : > { %2809 = vmatmul.mubr.msk.f32.gmra.mrb[14].mxu1 %vm439_vm2, %v3567_v40 }
  0x9a   : > { %2927 = vmatmul.mubr.msk.f32.gmra.mrb[6].mxu0 %vm439_vm2, %v3553_v49  ;;  %2825 = vmatprep.mubr.msk.f32.mxu1 %vm439_vm2, %v3428_v0 }
  0x9b   : > { %2929 = vmatprep.mubr.msk.f32.mxu0 %vm439_vm2, %v3557_v23 }
  0x9d   : > { %2826 = vmatmul.mubr.msk.f32.vlgmr.msra.gmra.mrb[8].mxu1 %vm439_vm2, %v3452_v13 }
  0x9e   : > { %2930 = vmatmul.mubr.msk.f32.gmra.mrb[8].mxu0 %vm439_vm2, %v3581_v2  ;;  %2828 = vmatprep.mubr.msk.f32.mxu1 %vm439_vm2, %v3471_v20 }
  0x9f   : > { %2932 = vmatprep.mubr.msk.f32.mxu0 %vm439_vm2, %v3584_v45 }
  0xa1   : > { %2829 = vmatmul.mubr.msk.f32.gmra.mrb[10].mxu1 %vm439_vm2, %v3498_v43 }
  0xa2   : > { %2933 = vmatmul.mubr.msk.f32.gmra.mrb[10].mxu0 %vm439_vm2, %v3601_v29  ;;  %2831 = vmatprep.mubr.msk.f32.mxu1 %vm439_vm2, %v3511_v52 }
  0xa3   : > { %2935 = vmatprep.mubr.msk.f32.mxu0 %vm439_vm2, %v3605_v62 }
  0xa5   : > { %2832 = vmatmul.mubr.msk.f32.gmra.mrb[12].mxu1 %vm439_vm2, %v3531_v41 }
  0xa6   : > { %2936 = vmatmul.mubr.msk.f32.gmra.mrb[12].mxu0 %vm439_vm2, %v3616_v8  ;;  %2834 = vmatprep.mubr.msk.f32.mxu1 %vm439_vm2, %v1215_v38 }
  0xa7   : > { %2938 = vmatprep.mubr.msk.f32.mxu0 %vm439_vm2, %v1913_v18 }
  0xa9   : > { %2835 = vmatmul.mubr.msk.f32.gmra.mrb[14].mxu1 %vm439_vm2, %v1217_v1 }
  0xaa   : > { %2939 = vmatmul.mubr.msk.f32.gmra.mrb[14].mxu0 %vm439_vm2, %v3517_v57 }
 0x150   : > { %v2789_v25 = vpop.f32.mrb[0].mxu1 }
 0x151   : > { %v1117_v26 = vpop.f32.mrb[1].mxu1 }
 0x154   : > { %v2792_v31 = vpop.f32.mrb[2].mxu1 }
 0x155   : > { %v1127_v32 = vpop.f32.mrb[3].mxu1 }
 0x158   : > { %v2795_v42 = vpop.f32.mrb[4].mxu1 }
 0x159   : > { %v1137_v44 = vpop.f32.mrb[5].mxu1 }
 0x15c   : > { %v2798_v47 = vpop.f32.mrb[6].mxu1 }
 0x15d   : > { %v1147_v48 = vpop.f32.mrb[7].mxu1 }
 0x161   : > { %v2919_v51 = vpop.f32.mrb[0].mxu0 }
 0x162   : > { %v2943_v54 = vadd.f32 %v2919_v51, %v2789_v25  ;;  %v1991_v55 = vpop.f32.mrb[1].mxu0 }
 0x163   : > { %v2944_v56 = vadd.f32 %v1991_v55, %v1117_v26 }
 0x164   : > { %2088 = vst.msk [vmem:[%s3845_s27 + $0x8] sm:$0xff] %vm2086_vm4, %v2943_v54  ;;  %v2104_v63 = vsel %vm2086_vm4, %v2943_v54, 0.0  ;;  %v2141_v0 = vmul.f32 %v2943_v54, %v2943_v54 }
 0x165   : > { %2087 = vst.msk [vmem:[%s3845_s27] sm:$0xff] %vm2086_vm4, %v2944_v56  ;;  %v2103_v3 = vsel %vm2086_vm4, %v2944_v56, 0.0  ;;  %v2140_v10 = vmul.f32 %v2944_v56, %v2944_v56  ;;  %v2922_v12 = vpop.f32.mrb[2].mxu0 }
 0x166   : > { %v2157_v13 = vsel %vm2086_vm4, %v2141_v0, 0.0  ;;  %v2105_v16 = vadd.f32 %v2104_v63, %v2103_v3  ;;  %v2945_v19 = vadd.f32 %v2922_v12, %v2792_v31  ;;  %v2001_v20 = vpop.f32.mrb[3].mxu0 }
 0x167   : > { %v2156_v22 = vsel %vm2086_vm4, %v2140_v10, 0.0  ;;  %v2946_v30 = vadd.f32 %v2001_v20, %v1127_v32 }
 0x168   : > { %v2158_v37 = vadd.f32 %v2157_v13, %v2156_v22  ;;  %2090 = vst.msk [vmem:[%s3845_s27 + $0x18] sm:$0xff] %vm2086_vm4, %v2945_v19  ;;  %v2143_v43 = vmul.f32 %v2945_v19, %v2945_v19  ;;  %v2108_v61 = vsel %vm2086_vm4, %v2945_v19, 0.0 }
 0x169   : > { %2089 = vst.msk [vmem:[%s3845_s27 + $0x10] sm:$0xff] %vm2086_vm4, %v2946_v30  ;;  %v2106_v46 = vsel %vm2086_vm4, %v2946_v30, 0.0  ;;  %v2142_v50 = vmul.f32 %v2946_v30, %v2946_v30  ;;  %v2925_v52 = vpop.f32.mrb[4].mxu0 }
 0x16a   : > { %v2107_v57 = vadd.f32 %v2106_v46, %v2105_v16  ;;  %v2947_v58 = vadd.f32 %v2925_v52, %v2795_v42  ;;  %v2011_v41 = vpop.f32.mrb[5].mxu0  ;;  %v2161_v40 = vsel %vm2086_vm4, %v2143_v43, 0.0 }
 0x16b   : > { %v2159_v7 = vsel %vm2086_vm4, %v2142_v50, 0.0  ;;  %v2948_v49 = vadd.f32 %v2011_v41, %v1137_v44 }
 0x16c   : > { %v2160_v23 = vadd.f32 %v2159_v7, %v2158_v37  ;;  %2092 = vst.msk [vmem:[%s3845_s27 + $0x28] sm:$0xff] %vm2086_vm4, %v2947_v58  ;;  %v2109_v39 = vadd.f32 %v2108_v61, %v2107_v57  ;;  %v2145_v33 = vmul.f32 %v2947_v58, %v2947_v58  ;;  %v2112_v60 = vsel %vm2086_vm4, %v2947_v58, 0.0 }
 0x16d   : > { %2091 = vst.msk [vmem:[%s3845_s27 + $0x20] sm:$0xff] %vm2086_vm4, %v2948_v49  ;;  %v2110_v2 = vsel %vm2086_vm4, %v2948_v49, 0.0  ;;  %v2144_v27 = vmul.f32 %v2948_v49, %v2948_v49  ;;  %v2928_v45 = vpop.f32.mrb[6].mxu0 }
 0x16e   : > { %v2111_v53 = vadd.f32 %v2110_v2, %v2109_v39  ;;  %v2162_v35 = vadd.f32 %v2161_v40, %v2160_v23  ;;  %v2949_v59 = vadd.f32 %v2928_v45, %v2798_v47  ;;  %v2021_v29 = vpop.f32.mrb[7].mxu0  ;;  %v2165_v24 = vsel %vm2086_vm4, %v2145_v33, 0.0 }
 0x16f   : > { %v2163_v62 = vsel %vm2086_vm4, %v2144_v27, 0.0  ;;  %v2950_v8 = vadd.f32 %v2021_v29, %v1147_v48 }
 0x170   : > { %v2164_v17 = vadd.f32 %v2163_v62, %v2162_v35  ;;  %2094 = vst.msk [vmem:[%s3845_s27 + $0x38] sm:$0xff] %vm2086_vm4, %v2949_v59  ;;  %v2113_v21 = vadd.f32 %v2112_v60, %v2111_v53  ;;  %v2827_v14 = vpop.f32.mrb[8].mxu1  ;;  %v2147_v28 = vmul.f32 %v2949_v59, %v2949_v59  ;;  %v2116_v9 = vsel %vm2086_vm4, %v2949_v59, 0.0 }
 0x171   : > { %2093 = vst.msk [vmem:[%s3845_s27 + $0x30] sm:$0xff] %vm2086_vm4, %v2950_v8  ;;  %v2114_v4 = vsel %vm2086_vm4, %v2950_v8, 0.0  ;;  %v2146_v5 = vmul.f32 %v2950_v8, %v2950_v8  ;;  %v2931_v11 = vpop.f32.mrb[8].mxu0  ;;  %v1333_v34 = vpop.f32.mrb[9].mxu1 }
 0x172   : > { %v2115_v6 = vadd.f32 %v2114_v4, %v2113_v21  ;;  %v2166_v36 = vadd.f32 %v2165_v24, %v2164_v17  ;;  %v2951_v38 = vadd.f32 %v2931_v11, %v2827_v14  ;;  %v2031_v1 = vpop.f32.mrb[9].mxu0  ;;  %v2169_v32 = vsel %vm2086_vm4, %v2147_v28, 0.0 }
 0x173   : > { %v2167_v15 = vsel %vm2086_vm4, %v2146_v5, 0.0  ;;  %v2952_v18 = vadd.f32 %v2031_v1, %v1333_v34 }
 0x174   : > { %v2168_v25 = vadd.f32 %v2167_v15, %v2166_v36  ;;  %2096 = vst.msk [vmem:[%s3845_s27 + $0x48] sm:$0xff] %vm2086_vm4, %v2951_v38  ;;  %v2117_v26 = vadd.f32 %v2116_v9, %v2115_v6  ;;  %v2830_v31 = vpop.f32.mrb[10].mxu1  ;;  %v2149_v42 = vmul.f32 %v2951_v38, %v2951_v38  ;;  %v2120_v0 = vsel %vm2086_vm4, %v2951_v38, 0.0 }
 0x175   : > { %2095 = vst.msk [vmem:[%s3845_s27 + $0x40] sm:$0xff] %vm2086_vm4, %v2952_v18  ;;  %v2118_v44 = vsel %vm2086_vm4, %v2952_v18, 0.0  ;;  %v2148_v47 = vmul.f32 %v2952_v18, %v2952_v18  ;;  %v2934_v48 = vpop.f32.mrb[10].mxu0  ;;  %v1343_v51 = vpop.f32.mrb[11].mxu1 }
 0x176   : > { %v2119_v54 = vadd.f32 %v2118_v44, %v2117_v26  ;;  %v2170_v55 = vadd.f32 %v2169_v32, %v2168_v25  ;;  %v2953_v56 = vadd.f32 %v2934_v48, %v2830_v31  ;;  %v2041_v63 = vpop.f32.mrb[11].mxu0  ;;  %v2173_v19 = vsel %vm2086_vm4, %v2149_v42, 0.0 }
 0x177   : > { %v2171_v3 = vsel %vm2086_vm4, %v2148_v47, 0.0  ;;  %v2954_v10 = vadd.f32 %v2041_v63, %v1343_v51 }
 0x178   : > { %v2172_v12 = vadd.f32 %v2171_v3, %v2170_v55  ;;  %2098 = vst.msk [vmem:[%s3845_s27 + $0x58] sm:$0xff] %vm2086_vm4, %v2953_v56  ;;  %v2121_v13 = vadd.f32 %v2120_v0, %v2119_v54  ;;  %v2833_v16 = vpop.f32.mrb[12].mxu1  ;;  %v2151_v20 = vmul.f32 %v2953_v56, %v2953_v56  ;;  %v2124_v58 = vsel %vm2086_vm4, %v2953_v56, 0.0 }
 0x179   : > { %2097 = vst.msk [vmem:[%s3845_s27 + $0x50] sm:$0xff] %vm2086_vm4, %v2954_v10  ;;  %v2122_v22 = vsel %vm2086_vm4, %v2954_v10, 0.0  ;;  %v2150_v30 = vmul.f32 %v2954_v10, %v2954_v10  ;;  %v2937_v37 = vpop.f32.mrb[12].mxu0  ;;  %v1353_v43 = vpop.f32.mrb[13].mxu1 }
 0x17a   : > { %v2123_v46 = vadd.f32 %v2122_v22, %v2121_v13  ;;  %v2174_v50 = vadd.f32 %v2173_v19, %v2172_v12  ;;  %v2955_v52 = vadd.f32 %v2937_v37, %v2833_v16  ;;  %v2051_v57 = vpop.f32.mrb[13].mxu0  ;;  %v2177_v39 = vsel %vm2086_vm4, %v2151_v20, 0.0 }
 0x17b   : > { %v2175_v41 = vsel %vm2086_vm4, %v2150_v30, 0.0  ;;  %v2956_v61 = vadd.f32 %v2051_v57, %v1353_v43 }
 0x17c   : > { %v2176_v7 = vadd.f32 %v2175_v41, %v2174_v50  ;;  %2100 = vst.msk [vmem:[%s3845_s27 + $0x68] sm:$0xff] %vm2086_vm4, %v2955_v52  ;;  %v2125_v49 = vadd.f32 %v2124_v58, %v2123_v46  ;;  %v2836_v23 = vpop.f32.mrb[14].mxu1  ;;  %v2153_v40 = vmul.f32 %v2955_v52, %v2955_v52  ;;  %v2128_v60 = vsel %vm2086_vm4, %v2955_v52, 0.0 }
 0x17d   : > { %2099 = vst.msk [vmem:[%s3845_s27 + $0x60] sm:$0xff] %vm2086_vm4, %v2956_v61  ;;  %v2126_v33 = vsel %vm2086_vm4, %v2956_v61, 0.0  ;;  %v2152_v2 = vmul.f32 %v2956_v61, %v2956_v61  ;;  %v2940_v27 = vpop.f32.mrb[14].mxu0  ;;  %v1363_v45 = vpop.f32.mrb[15].mxu1 }
 0x17e   : > { %v2127_v53 = vadd.f32 %v2126_v33, %v2125_v49  ;;  %v2178_v35 = vadd.f32 %v2177_v39, %v2176_v7  ;;  %v2957_v59 = vadd.f32 %v2940_v27, %v2836_v23  ;;  %v2061_v29 = vpop.f32.mrb[15].mxu0  ;;  %v2181_v14 = vsel %vm2086_vm4, %v2153_v40, 0.0 }
 0x17f   : > { %v2179_v62 = vsel %vm2086_vm4, %v2152_v2, 0.0  ;;  %v2958_v8 = vadd.f32 %v2061_v29, %v1363_v45 }
 0x180   : > { %v2180_v17 = vadd.f32 %v2179_v62, %v2178_v35  ;;  %2102 = vst.msk [vmem:[%s3845_s27 + $0x78] sm:$0xff] %vm2086_vm4, %v2957_v59  ;;  %v2129_v21 = vadd.f32 %v2128_v60, %v2127_v53  ;;  %v2155_v24 = vmul.f32 %v2957_v59, %v2957_v59  ;;  %v2132_v34 = vsel %vm2086_vm4, %v2957_v59, 0.0 }
 0x181   : > { %2101 = vst.msk [vmem:[%s3845_s27 + $0x70] sm:$0xff] %vm2086_vm4, %v2958_v8  ;;  %v2130_v28 = vsel %vm2086_vm4, %v2958_v8, 0.0  ;;  %v2154_v4 = vmul.f32 %v2958_v8, %v2958_v8 }
 0x182   : > { %v2131_v5 = vadd.f32 %v2130_v28, %v2129_v21  ;;  %v2182_v11 = vadd.f32 %v2181_v14, %v2180_v17  ;;  %v2185_v1 = vsel %vm2086_vm4, %v2155_v24, 0.0 }
 0x183   : > { %v2183_v6 = vsel %vm2086_vm4, %v2154_v4, 0.0 }
 0x184   : > { %v2133_v36 = vadd.f32 %v2132_v34, %v2131_v5  ;;  %v2184_v38 = vadd.f32 %v2183_v6, %v2182_v11 }
 0x186   : > { %v2134_v9 = vrot.slane %v2133_v36, 4  ;;  %v2186_v15 = vadd.f32 %v2185_v1, %v2184_v38 }
 0x188   : > { %v2135_v18 = vadd.f32 %v2134_v9, %v2133_v36  ;;  %v2187_v25 = vrot.slane %v2186_v15, 4 }
 0x18a   : > { %v2136_v26 = vrot.slane %v2135_v18, 2  ;;  %v2188_v31 = vadd.f32 %v2187_v25, %v2186_v15 }
 0x18c   : > { %v2137_v32 = vadd.f32 %v2136_v26, %v2135_v18  ;;  %v2189_v42 = vrot.slane %v2188_v31, 2 }
 0x18e   : > { %v2138_v44 = vrot.slane %v2137_v32, 1  ;;  %v2190_v47 = vadd.f32 %v2189_v42, %v2188_v31 }
 0x190   : > { %v2191_v48 = vrot.slane %v2190_v47, 1  ;;  %v2139_v51 = vadd.f32 %v2138_v44, %v2137_v32 }
 0x192   : > { %v2192_v54 = vadd.f32 %v2191_v48, %v2190_v47 }
 0x194   : > { %v2194_v55 = vsel %vm2193_vm5, %v2139_v51, %v2192_v54 }
 0x195   : > { %2196 = vst.msk [vmem:[%s340_s6] sm:$0x3] %vm2195_vm6, %v2194_v55 }
 0x196 PF: > { %s15_s19 = sadd.s32 1, %s3152_s19   ;;  %s3938_s15 = smov %s3144_s17 }
 0x197   : > { %p12_p10 = scmp.ge.s32.totalorder %s15_s19, 6   ;;  %s3939_s16 = smov %s3148_s18 }
 0x198   : > { %s3940_s17 = smov %s3943_s20  ;;  %s3941_s18 = smov %s3947_s21 }
 0x199   :  { %14 = sbr.rel (!%p12_p10) target bundleno = 3 (0x3), region = 85 }

</bundles_post_ra>
